<compile_context>
chip_gen: v6e
topology: v6e:2x2x1
jax: 0.10.0
libtpu: 0.0.40
codegen_flags: <defaults>
</compile_context>

<pallas_src>
import functools

import jax
import jax.numpy as jnp
from jax import lax
from jax.experimental import pallas as pl
from jax.experimental.pallas import tpu as pltpu

# ----------------------------------------------------------------------------
# Static geometry
# ----------------------------------------------------------------------------
H_IN, W_IN = 12, 27                  # input spatial size (gives fc1's 2944 features)
CIN, COUT = 3, 32
CIN_PAD = 8                          # pad Cin 3 -> 8 (full f32 sublane tile)
KH1, KW1 = 5, 5                      # conv1 kernel
KH2 = 5                              # conv2 kernel is (5, 1)
H1, W1V = H_IN - KH1 + 1, W_IN - KW1 + 1     # 8, 23  valid conv1 output
H2 = H1 - KH2 + 1                            # 4      valid conv2 output rows
MAX_OFF1 = (KH1 - 1) * W_IN + (KW1 - 1)      # 112: largest conv1 tap lane offset
MAX_OFF2 = (KH2 - 1) * W_IN                  # 108: largest conv2 tap lane offset
SW = 384                             # per-sample lane stride (multiple of 128, >= 324+4)
COLS_FC = H2 * W_IN                  # 108: per-sample fc window (h*27 + w)
N_FC_OUT = 3
K1 = KH1 * KW1 * CIN_PAD             # 200: conv1 stacked contraction depth
K2 = KH2 * COUT                      # 160: conv2 stacked contraction depth
MAX_TILE_N = 8                       # samples folded into lanes per grid step


# ----------------------------------------------------------------------------
# Fused kernel: conv1+ReLU -> conv2+ReLU -> fc1+ReLU (one block = tile_n samples)
# ----------------------------------------------------------------------------
def _convnet_kernel(tile_n, x_ref, w1_ref, b1_ref, w2_ref, b2_ref,
                    wfc_ref, bfc_ref, o_ref):
    tot1 = tile_n * SW - MAX_OFF1            # conv1 output columns (all samples)
    tot2 = tot1 - MAX_OFF2                   # conv2 output columns (all samples)

    x = x_ref[...]                            # (8, tile_n*SW) f32

    # ---- conv1 + ReLU: one K-stacked MXU matmul (32, 200) @ (200, tot1) ----
    # f32 slices are sublane-aligned (8-row pieces); cast once to bf16.
    rhs1 = jnp.concatenate(
        [x[:, di * W_IN + dj: di * W_IN + dj + tot1]
         for di in range(KH1) for dj in range(KW1)], axis=0)          # (200, tot1)
    a1 = jnp.dot(w1_ref[...], rhs1.astype(jnp.bfloat16),
                 preferred_element_type=jnp.float32)                  # (32, tot1) f32
    a1 = jnp.maximum(a1 + b1_ref[...], 0.0)

    # ---- conv2 + ReLU: one K-stacked MXU matmul (32, 160) @ (160, tot2) ----
    a1b = a1.astype(jnp.bfloat16)             # 32-row pieces stay bf16-tile aligned
    rhs2 = jnp.concatenate(
        [a1b[:, dh * W_IN: dh * W_IN + tot2] for dh in range(KH2)], axis=0)  # (160, tot2)
    a2 = jnp.dot(w2_ref[...], rhs2, preferred_element_type=jnp.float32)      # (32, tot2)
    a2 = jnp.maximum(a2 + b2_ref[...], 0.0)

    # ---- fc1 + ReLU on the VPU/XLU (no MXU); lane-dense (3, 32, 108) weight ----
    wfcs = [wfc_ref[k] for k in range(N_FC_OUT)]       # hoisted weight loads
    rows = []
    for n in range(tile_n):                            # tile_n <= 8, tiny epilogue
        a2n = a2[:, n * SW: n * SW + COLS_FC]          # (32, 108) f32
        cols = [jnp.sum(a2n * wfcs[k], axis=1, keepdims=True)   # lane reduce -> (32, 1)
                for k in range(N_FC_OUT)]
        per_c = jnp.concatenate(cols, axis=1)          # (32, 3)
        rows.append(jnp.sum(per_c, axis=0, keepdims=True))      # sublane reduce -> (1, 3)
    out = rows[0] if tile_n == 1 else jnp.concatenate(rows, axis=0)  # (tile_n, 3)
    o_ref[...] = jnp.maximum(out + bfc_ref[...], 0.0)  # single store per block


# ----------------------------------------------------------------------------
# Parameters (PyTorch layouts) and one-time repack into kernel operands
# ----------------------------------------------------------------------------
def init_params(key):
    k1, k2, k3, k4, k5, k6 = jax.random.split(key, 6)
    return {
        "conv1_w": jax.random.normal(k1, (32, 3, 5, 5), jnp.float32) * 0.05,
        "conv1_b": jax.random.normal(k2, (32,), jnp.float32) * 0.05,
        "conv2_w": jax.random.normal(k3, (32, 32, 5, 1), jnp.float32) * 0.05,
        "conv2_b": jax.random.normal(k4, (32,), jnp.float32) * 0.05,
        "fc1_w":   jax.random.normal(k5, (3, 2944), jnp.float32) * 0.02,  # torch Linear: (out, in)
        "fc1_b":   jax.random.normal(k6, (3,), jnp.float32) * 0.02,
    }


def prepare_params(params):
    """One-time repack of PyTorch-layout params into matmul-ready operands."""
    # conv1 -> (32, 200) bf16; K order = (di, dj, cin_pad), matching rhs1 concat.
    w1 = jnp.pad(params["conv1_w"], ((0, 0), (0, CIN_PAD - CIN), (0, 0), (0, 0)))
    w1s = w1.transpose(0, 2, 3, 1).reshape(COUT, K1).astype(jnp.bfloat16)
    # conv2 -> (32, 160) bf16; K order = (dh, cin), matching rhs2 concat.
    w2s = (params["conv2_w"][:, :, :, 0].transpose(0, 2, 1)
           .reshape(COUT, K2).astype(jnp.bfloat16))
    # fc1 -> lane-dense (3, 32, 108): column index = h*27 + w; w in [23,27) gets 0,
    # preserving PyTorch's flatten(1) order exactly.
    wfc = params["fc1_w"].reshape(N_FC_OUT, COUT, H2, W1V)
    wfc = jnp.pad(wfc, ((0, 0), (0, 0), (0, 0), (0, W_IN - W1V)))
    wfc = wfc.reshape(N_FC_OUT, COUT, COLS_FC).astype(jnp.float32)
    return {
        "w1s": w1s,
        "b1": params["conv1_b"].reshape(COUT, 1).astype(jnp.float32),
        "w2s": w2s,
        "b2": params["conv2_b"].reshape(COUT, 1).astype(jnp.float32),
        "wfc": wfc,
        "bfc": params["fc1_b"].reshape(1, N_FC_OUT).astype(jnp.float32),
    }


# ----------------------------------------------------------------------------
# Forward pass
# ----------------------------------------------------------------------------
@jax.jit
def simple_convnet_forward(prep, x):
    """x: (N, 3, 12, 27) NCHW float32  ->  (N, 3) float32."""
    n = x.shape[0]
    tile_n = n if n < MAX_TILE_N else MAX_TILE_N
    nb = pl.cdiv(n, tile_n)
    n_pad = nb * tile_n

    # Per-forward host glue: fold batch into lanes at a fixed 384-column
    # per-sample stride (multiple of 128 so batch tiles satisfy the lane rule).
    xf = x.astype(jnp.float32).reshape(n, CIN, H_IN * W_IN)
    xf = jnp.pad(xf, ((0, n_pad - n), (0, CIN_PAD - CIN), (0, SW - H_IN * W_IN)))
    xf = xf.transpose(1, 0, 2).reshape(CIN_PAD, n_pad * SW)

    kernel = functools.partial(_convnet_kernel, tile_n)

    out = pl.pallas_call(
        kernel,
        out_shape=jax.ShapeDtypeStruct((n_pad, N_FC_OUT), jnp.float32),
        grid=(nb,),
        in_specs=[
            pl.BlockSpec((CIN_PAD, tile_n * SW), lambda i: (0, i)),        # x (batch tile)
            pl.BlockSpec((COUT, K1), lambda i: (0, 0)),                    # conv1 w (stacked)
            pl.BlockSpec((COUT, 1), lambda i: (0, 0)),                     # conv1 b
            pl.BlockSpec((COUT, K2), lambda i: (0, 0)),                    # conv2 w (stacked)
            pl.BlockSpec((COUT, 1), lambda i: (0, 0)),                     # conv2 b
            pl.BlockSpec((N_FC_OUT, COUT, COLS_FC), lambda i: (0, 0, 0)),  # fc1 w (lane-dense)
            pl.BlockSpec((1, N_FC_OUT), lambda i: (0, 0)),                 # fc1 b
        ],
        out_specs=pl.BlockSpec((tile_n, N_FC_OUT), lambda i: (i, 0)),
        compiler_params=pltpu.CompilerParams(
            dimension_semantics=("parallel",)),      # batch tiles shard across v7x cores
    )(xf, prep["w1s"], prep["b1"], prep["w2s"], prep["b2"],
      prep["wfc"], prep["bfc"])
    return out[:n]


# ----------------------------------------------------------------------------
# Pure-JAX reference (correctness check only)
# ----------------------------------------------------------------------------
def reference_forward(params, x):
    dn = ("NCHW", "OIHW", "NCHW")
    hi = lax.Precision.HIGHEST
    y = lax.conv_general_dilated(x, params["conv1_w"], (1, 1), "VALID",
                                 dimension_numbers=dn, precision=hi)
    y = jax.nn.relu(y + params["conv1_b"].reshape(1, -1, 1, 1))
    y = lax.conv_general_dilated(y, params["conv2_w"], (1, 1), "VALID",
                                 dimension_numbers=dn, precision=hi)
    y = jax.nn.relu(y + params["conv2_b"].reshape(1, -1, 1, 1))
    y = y.reshape(y.shape[0], -1)                              # torch.flatten(x, 1)
    y = jnp.dot(y, params["fc1_w"].T, precision=hi) + params["fc1_b"]
    return jax.nn.relu(y)


if __name__ == "__main__":
    key = jax.random.PRNGKey(0)
    kx, kp = jax.random.split(key)
    # Spatial size chosen so flattened features = 2944 (see header note).
    x = jax.random.normal(kx, (2, CIN, H_IN, W_IN), jnp.float32)
    params = init_params(kp)
    prep = prepare_params(params)

    out = jax.block_until_ready(simple_convnet_forward(prep, x))
    assert out.shape == (2, N_FC_OUT) and out.dtype == jnp.float32

    ref = reference_forward(params, x)
    # bf16 conv operands (f32 accumulation) vs f32 reference: keep 5e-2 rtol,
    # atol relaxed slightly for near-zero post-ReLU outputs.
    assert jnp.allclose(out, ref, rtol=5e-2, atol=1e-2), (out, ref)

    print("KERNEL_OK")
</pallas_src>

<mosaic_0001>
module attributes {stable_mosaic.version = 11 : i64} {
  func.func @_convnet_kernel(%arg0: i32, %arg1: memref<8x768xf32, #tpu.memory_space<vmem>>, %arg2: memref<32x200xbf16, #tpu.memory_space<vmem>>, %arg3: memref<32x1xf32, #tpu.memory_space<vmem>>, %arg4: memref<32x160xbf16, #tpu.memory_space<vmem>>, %arg5: memref<32x1xf32, #tpu.memory_space<vmem>>, %arg6: memref<3x32x108xf32, #tpu.memory_space<vmem>>, %arg7: memref<1x3xf32, #tpu.memory_space<vmem>>, %arg8: memref<2x3xf32, #tpu.memory_space<vmem>>) attributes {dimension_semantics = [#tpu.dimension_semantics<parallel>], iteration_bounds = array<i64: 1>, scalar_prefetch = 0 : i64, scratch_operands = 0 : i64, tpu.core_type = #tpu.core_type<tc>, window_params = [{transform_indices = @transform_0, window_bounds = array<i64: 8, 768>}, {pipeline_mode = #tpu.pipeline_mode<synchronous>, transform_indices = @transform_1, window_bounds = array<i64: 32, 200>}, {pipeline_mode = #tpu.pipeline_mode<synchronous>, transform_indices = @transform_2, window_bounds = array<i64: 32, 1>}, {pipeline_mode = #tpu.pipeline_mode<synchronous>, transform_indices = @transform_3, window_bounds = array<i64: 32, 160>}, {pipeline_mode = #tpu.pipeline_mode<synchronous>, transform_indices = @transform_4, window_bounds = array<i64: 32, 1>}, {pipeline_mode = #tpu.pipeline_mode<synchronous>, transform_indices = @transform_5, window_bounds = array<i64: 3, 32, 108>}, {pipeline_mode = #tpu.pipeline_mode<synchronous>, transform_indices = @transform_6, window_bounds = array<i64: 1, 3>}, {transform_indices = @transform_7, window_bounds = array<i64: 2, 3>}]} {
    %c0 = arith.constant 0 : index
    %c0_0 = arith.constant 0 : index
    %0 = vector.load %arg1[%c0, %c0_0] : memref<8x768xf32, #tpu.memory_space<vmem>>, vector<8x768xf32>
    %1 = vector.extract_strided_slice %0 {offsets = [0, 0], sizes = [8, 656], strides = [1, 1]} : vector<8x768xf32> to vector<8x656xf32>
    %2 = vector.extract_strided_slice %0 {offsets = [0, 1], sizes = [8, 656], strides = [1, 1]} : vector<8x768xf32> to vector<8x656xf32>
    %3 = vector.extract_strided_slice %0 {offsets = [0, 2], sizes = [8, 656], strides = [1, 1]} : vector<8x768xf32> to vector<8x656xf32>
    %4 = vector.extract_strided_slice %0 {offsets = [0, 3], sizes = [8, 656], strides = [1, 1]} : vector<8x768xf32> to vector<8x656xf32>
    %5 = vector.extract_strided_slice %0 {offsets = [0, 4], sizes = [8, 656], strides = [1, 1]} : vector<8x768xf32> to vector<8x656xf32>
    %6 = vector.extract_strided_slice %0 {offsets = [0, 27], sizes = [8, 656], strides = [1, 1]} : vector<8x768xf32> to vector<8x656xf32>
    %7 = vector.extract_strided_slice %0 {offsets = [0, 28], sizes = [8, 656], strides = [1, 1]} : vector<8x768xf32> to vector<8x656xf32>
    %8 = vector.extract_strided_slice %0 {offsets = [0, 29], sizes = [8, 656], strides = [1, 1]} : vector<8x768xf32> to vector<8x656xf32>
    %9 = vector.extract_strided_slice %0 {offsets = [0, 30], sizes = [8, 656], strides = [1, 1]} : vector<8x768xf32> to vector<8x656xf32>
    %10 = vector.extract_strided_slice %0 {offsets = [0, 31], sizes = [8, 656], strides = [1, 1]} : vector<8x768xf32> to vector<8x656xf32>
    %11 = vector.extract_strided_slice %0 {offsets = [0, 54], sizes = [8, 656], strides = [1, 1]} : vector<8x768xf32> to vector<8x656xf32>
    %12 = vector.extract_strided_slice %0 {offsets = [0, 55], sizes = [8, 656], strides = [1, 1]} : vector<8x768xf32> to vector<8x656xf32>
    %13 = vector.extract_strided_slice %0 {offsets = [0, 56], sizes = [8, 656], strides = [1, 1]} : vector<8x768xf32> to vector<8x656xf32>
    %14 = vector.extract_strided_slice %0 {offsets = [0, 57], sizes = [8, 656], strides = [1, 1]} : vector<8x768xf32> to vector<8x656xf32>
    %15 = vector.extract_strided_slice %0 {offsets = [0, 58], sizes = [8, 656], strides = [1, 1]} : vector<8x768xf32> to vector<8x656xf32>
    %16 = vector.extract_strided_slice %0 {offsets = [0, 81], sizes = [8, 656], strides = [1, 1]} : vector<8x768xf32> to vector<8x656xf32>
    %17 = vector.extract_strided_slice %0 {offsets = [0, 82], sizes = [8, 656], strides = [1, 1]} : vector<8x768xf32> to vector<8x656xf32>
    %18 = vector.extract_strided_slice %0 {offsets = [0, 83], sizes = [8, 656], strides = [1, 1]} : vector<8x768xf32> to vector<8x656xf32>
    %19 = vector.extract_strided_slice %0 {offsets = [0, 84], sizes = [8, 656], strides = [1, 1]} : vector<8x768xf32> to vector<8x656xf32>
    %20 = vector.extract_strided_slice %0 {offsets = [0, 85], sizes = [8, 656], strides = [1, 1]} : vector<8x768xf32> to vector<8x656xf32>
    %21 = vector.extract_strided_slice %0 {offsets = [0, 108], sizes = [8, 656], strides = [1, 1]} : vector<8x768xf32> to vector<8x656xf32>
    %22 = vector.extract_strided_slice %0 {offsets = [0, 109], sizes = [8, 656], strides = [1, 1]} : vector<8x768xf32> to vector<8x656xf32>
    %23 = vector.extract_strided_slice %0 {offsets = [0, 110], sizes = [8, 656], strides = [1, 1]} : vector<8x768xf32> to vector<8x656xf32>
    %24 = vector.extract_strided_slice %0 {offsets = [0, 111], sizes = [8, 656], strides = [1, 1]} : vector<8x768xf32> to vector<8x656xf32>
    %25 = vector.extract_strided_slice %0 {offsets = [0, 112], sizes = [8, 656], strides = [1, 1]} : vector<8x768xf32> to vector<8x656xf32>
    %26 = tpu.concatenate %1, %2, %3, %4, %5, %6, %7, %8, %9, %10, %11, %12, %13, %14, %15, %16 in 0 : vector<8x656xf32>, vector<8x656xf32>, vector<8x656xf32>, vector<8x656xf32>, vector<8x656xf32>, vector<8x656xf32>, vector<8x656xf32>, vector<8x656xf32>, vector<8x656xf32>, vector<8x656xf32>, vector<8x656xf32>, vector<8x656xf32>, vector<8x656xf32>, vector<8x656xf32>, vector<8x656xf32>, vector<8x656xf32> -> vector<128x656xf32>
    %27 = tpu.concatenate %17, %18, %19, %20, %21, %22, %23, %24, %25 in 0 : vector<8x656xf32>, vector<8x656xf32>, vector<8x656xf32>, vector<8x656xf32>, vector<8x656xf32>, vector<8x656xf32>, vector<8x656xf32>, vector<8x656xf32>, vector<8x656xf32> -> vector<72x656xf32>
    %28 = tpu.concatenate %26, %27 in 0 : vector<128x656xf32>, vector<72x656xf32> -> vector<200x656xf32>
    %c0_1 = arith.constant 0 : index
    %c0_2 = arith.constant 0 : index
    %29 = vector.load %arg2[%c0_1, %c0_2] : memref<32x200xbf16, #tpu.memory_space<vmem>>, vector<32x200xbf16>
    %30 = arith.truncf %28 : vector<200x656xf32> to vector<200x656xbf16>
    %cst = arith.constant dense<0.000000e+00> : vector<32x656xf32>
    %31 = tpu.matmul %29, %30, %cst {dimension_numbers = #tpu.dot_dimension_numbers<[1], [0], [0], [1], [0, 0, 1, 1], [], []>} : vector<32x200xbf16>, vector<200x656xbf16>, vector<32x656xf32> -> vector<32x656xf32>
    %c0_3 = arith.constant 0 : index
    %c0_4 = arith.constant 0 : index
    %32 = vector.load %arg3[%c0_3, %c0_4] : memref<32x1xf32, #tpu.memory_space<vmem>>, vector<32x1xf32>
    %33 = vector.broadcast %32 : vector<32x1xf32> to vector<32x656xf32>
    %34 = arith.addf %31, %33 : vector<32x656xf32>
    %cst_5 = arith.constant 0.000000e+00 : f32
    %35 = vector.broadcast %cst_5 : f32 to vector<32x656xf32>
    %36 = arith.maximumf %34, %35 : vector<32x656xf32>
    %37 = arith.truncf %36 : vector<32x656xf32> to vector<32x656xbf16>
    %38 = vector.extract_strided_slice %37 {offsets = [0, 0], sizes = [32, 548], strides = [1, 1]} : vector<32x656xbf16> to vector<32x548xbf16>
    %39 = vector.extract_strided_slice %37 {offsets = [0, 27], sizes = [32, 548], strides = [1, 1]} : vector<32x656xbf16> to vector<32x548xbf16>
    %40 = vector.extract_strided_slice %37 {offsets = [0, 54], sizes = [32, 548], strides = [1, 1]} : vector<32x656xbf16> to vector<32x548xbf16>
    %41 = vector.extract_strided_slice %37 {offsets = [0, 81], sizes = [32, 548], strides = [1, 1]} : vector<32x656xbf16> to vector<32x548xbf16>
    %42 = vector.extract_strided_slice %37 {offsets = [0, 108], sizes = [32, 548], strides = [1, 1]} : vector<32x656xbf16> to vector<32x548xbf16>
    %43 = tpu.concatenate %38, %39, %40, %41, %42 in 0 : vector<32x548xbf16>, vector<32x548xbf16>, vector<32x548xbf16>, vector<32x548xbf16>, vector<32x548xbf16> -> vector<160x548xbf16>
    %c0_6 = arith.constant 0 : index
    %c0_7 = arith.constant 0 : index
    %44 = vector.load %arg4[%c0_6, %c0_7] : memref<32x160xbf16, #tpu.memory_space<vmem>>, vector<32x160xbf16>
    %cst_8 = arith.constant dense<0.000000e+00> : vector<32x548xf32>
    %45 = tpu.matmul %44, %43, %cst_8 {dimension_numbers = #tpu.dot_dimension_numbers<[1], [0], [0], [1], [0, 0, 1, 1], [], []>} : vector<32x160xbf16>, vector<160x548xbf16>, vector<32x548xf32> -> vector<32x548xf32>
    %c0_9 = arith.constant 0 : index
    %c0_10 = arith.constant 0 : index
    %46 = vector.load %arg5[%c0_9, %c0_10] : memref<32x1xf32, #tpu.memory_space<vmem>>, vector<32x1xf32>
    %47 = vector.broadcast %46 : vector<32x1xf32> to vector<32x548xf32>
    %48 = arith.addf %45, %47 : vector<32x548xf32>
    %cst_11 = arith.constant 0.000000e+00 : f32
    %49 = vector.broadcast %cst_11 : f32 to vector<32x548xf32>
    %50 = arith.maximumf %48, %49 : vector<32x548xf32>
    %c0_12 = arith.constant 0 : index
    %c0_13 = arith.constant 0 : index
    %c0_14 = arith.constant 0 : index
    %51 = vector.load %arg6[%c0_12, %c0_13, %c0_14] : memref<3x32x108xf32, #tpu.memory_space<vmem>>, vector<1x32x108xf32>
    %52 = vector.shape_cast %51 : vector<1x32x108xf32> to vector<32x108xf32>
    %c1 = arith.constant 1 : index
    %c0_15 = arith.constant 0 : index
    %c0_16 = arith.constant 0 : index
    %53 = vector.load %arg6[%c1, %c0_15, %c0_16] : memref<3x32x108xf32, #tpu.memory_space<vmem>>, vector<1x32x108xf32>
    %54 = vector.shape_cast %53 : vector<1x32x108xf32> to vector<32x108xf32>
    %c2 = arith.constant 2 : index
    %c0_17 = arith.constant 0 : index
    %c0_18 = arith.constant 0 : index
    %55 = vector.load %arg6[%c2, %c0_17, %c0_18] : memref<3x32x108xf32, #tpu.memory_space<vmem>>, vector<1x32x108xf32>
    %56 = vector.shape_cast %55 : vector<1x32x108xf32> to vector<32x108xf32>
    %57 = vector.extract_strided_slice %50 {offsets = [0, 0], sizes = [32, 108], strides = [1, 1]} : vector<32x548xf32> to vector<32x108xf32>
    %58 = arith.mulf %57, %52 : vector<32x108xf32>
    %cst_19 = arith.constant dense<0.000000e+00> : vector<32xf32>
    %59 = vector.multi_reduction <add>, %58, %cst_19 [1] : vector<32x108xf32> to vector<32xf32>
    %60 = vector.shape_cast %59 : vector<32xf32> to vector<32x1xf32>
    %61 = arith.mulf %57, %54 : vector<32x108xf32>
    %cst_20 = arith.constant dense<0.000000e+00> : vector<32xf32>
    %62 = vector.multi_reduction <add>, %61, %cst_20 [1] : vector<32x108xf32> to vector<32xf32>
    %63 = vector.shape_cast %62 : vector<32xf32> to vector<32x1xf32>
    %64 = arith.mulf %57, %56 : vector<32x108xf32>
    %cst_21 = arith.constant dense<0.000000e+00> : vector<32xf32>
    %65 = vector.multi_reduction <add>, %64, %cst_21 [1] : vector<32x108xf32> to vector<32xf32>
    %66 = vector.shape_cast %65 : vector<32xf32> to vector<32x1xf32>
    %67 = tpu.concatenate %60, %63, %66 in 1 : vector<32x1xf32>, vector<32x1xf32>, vector<32x1xf32> -> vector<32x3xf32>
    %cst_22 = arith.constant dense<0.000000e+00> : vector<3xf32>
    %68 = vector.multi_reduction <add>, %67, %cst_22 [0] : vector<32x3xf32> to vector<3xf32>
    %69 = vector.shape_cast %68 : vector<3xf32> to vector<1x3xf32>
    %70 = vector.extract_strided_slice %50 {offsets = [0, 384], sizes = [32, 108], strides = [1, 1]} : vector<32x548xf32> to vector<32x108xf32>
    %71 = arith.mulf %70, %52 : vector<32x108xf32>
    %cst_23 = arith.constant dense<0.000000e+00> : vector<32xf32>
    %72 = vector.multi_reduction <add>, %71, %cst_23 [1] : vector<32x108xf32> to vector<32xf32>
    %73 = vector.shape_cast %72 : vector<32xf32> to vector<32x1xf32>
    %74 = arith.mulf %70, %54 : vector<32x108xf32>
    %cst_24 = arith.constant dense<0.000000e+00> : vector<32xf32>
    %75 = vector.multi_reduction <add>, %74, %cst_24 [1] : vector<32x108xf32> to vector<32xf32>
    %76 = vector.shape_cast %75 : vector<32xf32> to vector<32x1xf32>
    %77 = arith.mulf %70, %56 : vector<32x108xf32>
    %cst_25 = arith.constant dense<0.000000e+00> : vector<32xf32>
    %78 = vector.multi_reduction <add>, %77, %cst_25 [1] : vector<32x108xf32> to vector<32xf32>
    %79 = vector.shape_cast %78 : vector<32xf32> to vector<32x1xf32>
    %80 = tpu.concatenate %73, %76, %79 in 1 : vector<32x1xf32>, vector<32x1xf32>, vector<32x1xf32> -> vector<32x3xf32>
    %cst_26 = arith.constant dense<0.000000e+00> : vector<3xf32>
    %81 = vector.multi_reduction <add>, %80, %cst_26 [0] : vector<32x3xf32> to vector<3xf32>
    %82 = vector.shape_cast %81 : vector<3xf32> to vector<1x3xf32>
    %83 = tpu.concatenate %69, %82 in 0 : vector<1x3xf32>, vector<1x3xf32> -> vector<2x3xf32>
    %c0_27 = arith.constant 0 : index
    %c0_28 = arith.constant 0 : index
    %84 = vector.load %arg7[%c0_27, %c0_28] : memref<1x3xf32, #tpu.memory_space<vmem>>, vector<1x3xf32>
    %85 = vector.broadcast %84 : vector<1x3xf32> to vector<2x3xf32>
    %86 = arith.addf %83, %85 : vector<2x3xf32>
    %cst_29 = arith.constant 0.000000e+00 : f32
    %87 = vector.broadcast %cst_29 : f32 to vector<2x3xf32>
    %88 = arith.maximumf %86, %87 : vector<2x3xf32>
    %c0_30 = arith.constant 0 : index
    %c0_31 = arith.constant 0 : index
    %89 = vector.load %arg8[%c0_30, %c0_31] : memref<2x3xf32, #tpu.memory_space<vmem>>, vector<2x3xf32>
    tpu.vector_store %arg8[%c0_30, %c0_31], %88 {strides = array<i32>} : memref<2x3xf32, #tpu.memory_space<vmem>>, vector<2x3xf32>,
    return
  }
  func.func @transform_0(%arg0: i32) -> (i32, i32) {
    %c0_i32 = arith.constant 0 : i32
    %c0_i32_0 = arith.constant 0 : i32
    return %c0_i32, %arg0 : i32, i32
  }
  func.func @transform_1(%arg0: i32) -> (i32, i32) {
    %c0_i32 = arith.constant 0 : i32
    %c0_i32_0 = arith.constant 0 : i32
    %c0_i32_1 = arith.constant 0 : i32
    return %c0_i32, %c0_i32_0 : i32, i32
  }
  func.func @transform_2(%arg0: i32) -> (i32, i32) {
    %c0_i32 = arith.constant 0 : i32
    %c0_i32_0 = arith.constant 0 : i32
    %c0_i32_1 = arith.constant 0 : i32
    return %c0_i32, %c0_i32_0 : i32, i32
  }
  func.func @transform_3(%arg0: i32) -> (i32, i32) {
    %c0_i32 = arith.constant 0 : i32
    %c0_i32_0 = arith.constant 0 : i32
    %c0_i32_1 = arith.constant 0 : i32
    return %c0_i32, %c0_i32_0 : i32, i32
  }
  func.func @transform_4(%arg0: i32) -> (i32, i32) {
    %c0_i32 = arith.constant 0 : i32
    %c0_i32_0 = arith.constant 0 : i32
    %c0_i32_1 = arith.constant 0 : i32
    return %c0_i32, %c0_i32_0 : i32, i32
  }
  func.func @transform_5(%arg0: i32) -> (i32, i32, i32) {
    %c0_i32 = arith.constant 0 : i32
    %c0_i32_0 = arith.constant 0 : i32
    %c0_i32_1 = arith.constant 0 : i32
    %c0_i32_2 = arith.constant 0 : i32
    return %c0_i32, %c0_i32_0, %c0_i32_1 : i32, i32, i32
  }
  func.func @transform_6(%arg0: i32) -> (i32, i32) {
    %c0_i32 = arith.constant 0 : i32
    %c0_i32_0 = arith.constant 0 : i32
    %c0_i32_1 = arith.constant 0 : i32
    return %c0_i32, %c0_i32_0 : i32, i32
  }
  func.func @transform_7(%arg0: i32) -> (i32, i32) {
    %c0_i32 = arith.constant 0 : i32
    %c0_i32_0 = arith.constant 0 : i32
    return %arg0, %c0_i32 : i32, i32
  }
}

</mosaic_0001>

<bundles_post_ra>
// kernel: simple_convnet_forward.1
= control target key start
LH: loop header
LB: loop body
LE: loop exit
PB: predicated region body
PF: predicated region fallthrough
CT: control target
= control target key end

     0   :  { %s1878_s9 = smov 100   ;;  %s1879_s10 = smov 98   ;;  %s3152_s0 = inlined_call_operand.vmem [shape: f32[8,768], index: 0, kind: input, shape index: {}]   ;;  %s3153_s1 = inlined_call_operand.vmem [shape: bf16[32,200], index: 1, kind: input, shape index: {}]   ;;  %s3154_s2 = inlined_call_operand.vmem [shape: f32[32,1], index: 2, kind: input, shape index: {}]   ;;  %s3155_s3 = inlined_call_operand.vmem [shape: bf16[32,160], index: 3, kind: input, shape index: {}]   ;;  %s3156_s4 = inlined_call_operand.vmem [shape: f32[32,1], index: 4, kind: input, shape index: {}]   ;;  %s3157_s5 = inlined_call_operand.vmem [shape: f32[3,32,108], index: 5, kind: input, shape index: {}]   ;;  %s3158_s6 = inlined_call_operand.vmem [shape: f32[1,3], index: 6, kind: input, shape index: {}]   ;;  %s3159_s7 = inlined_call_operand.hbm [shape: f32[2,3], index: 7, kind: output, shape index: {}]  }
   0x1   :  { %v1941_v0 = vld [vmem:[%s3152_s0 + $0x8] sm:$0xff]  ;;  %v1946_v1 = vld [vmem:[%s3152_s0 + $0x10] sm:$0xff]  ;;  %v1951_v2 = vld [vmem:[%s3152_s0] sm:$0xff] }
   0x2   :  { %3183 = vst [vmem:[#allocation5_spill] sm:$0xff] %v1946_v1  ;;  %v1955_v3 = vpack.i.bf16 %v1946_v1, %v1941_v0  ;;  %v1510_v4 = vpack.i.bf16 %v1941_v0, %v1951_v2  ;;  %v1962_v5 = vld [vmem:[%s3152_s0 + $0x18] sm:$0xff] }
   0x3   :  { %v1525_v6 = vpack.i.bf16 %v1951_v2, %v1962_v5  ;;  %v1515_v7 = vpack.i.bf16 %v1962_v5, %v1946_v1 }
   0x4   :  { %1521 = vrot.lane.b32.xlu1 %v1955_v3, %s1878_s9  ;;  %1511 = vrot.lane.b32.xlu0 %v1510_v4, %s1879_s10 }
   0x5   :  { %12 = vsyncpa [#allocation3], 0  ;;  %s1880_s11 = smov 99   ;;  %s1881_s12 = smov 101   ;;  %v1980_v8 = vld [vmem:[%s3152_s0 + $0x20] sm:$0xff]  ;;  %v1985_v9 = vld [vmem:[%s3152_s0 + $0x28] sm:$0xff]  ;;  %v1645_v11 = vpack.i.bf16 %v1962_v5, %v1951_v2 }
   0x6   :  { %s1882_s13 = smov 102   ;;  %s1883_s14 = smov 126   ;;  %v1580_v10 = vpack.i.bf16 %v1985_v9, %v1980_v8  ;;  %vm172_vm0 = vcmask 818176   ;;  %vm220_vm1 = vcmask 801792   ;;  %vm196_vm2 = vcmask 809984  }
   0x7   :  { %s1884_s19 = smov 125   ;;  %s1885_s20 = smov 127   ;;  %vm148_vm3 = vcmask 826368   ;;  %vm412_vm4 = vcmask 834560   ;;  %vm76_vm5 = vcmask 1031168   ;;  %vm100_vm6 = vcmask 1022976  }
   0x8   :  { %1526 = vrot.lane.b32.xlu1 %v1525_v6, %s1878_s9  ;;  %1516 = vrot.lane.b32.xlu0 %v1515_v7, %s1879_s10  ;;  %s1886_s21 = smov 70   ;;  %s1887_s22 = smov 47   ;;  %vm52_vm7 = vcmask 1039360   ;;  %vm316_vm8 = vcmask 588800   ;;  %vm364_vm9 = vcmask 572416   ;;  %vm388_vm10 = vcmask 384000  }
   0x9   :  { %s1888_s23 = smov 71   ;;  %s1889_s24 = smov 72   ;;  %vm340_vm11 = vcmask 580608   ;;  %vm268_vm12 = vcmask 605184   ;;  %vm292_vm13 = vcmask 596992   ;;  %vm244_vm14 = vcmask 793600  }
   0xa   :  { %s1890_s25 = smov 73   ;;  %s1891_s26 = smov 74   ;;  %vm124_vm15 = vcmask 1014784  }
   0xb   :  { %s1892_s27 = smov 97   ;;  %s1893_s28 = smov 124  }
   0xc   :  { %1536 = vrot.lane.b32.xlu1 %v1525_v6, %s1880_s11  ;;  %1531 = vrot.lane.b32.xlu0 %v1955_v3, %s1880_s11  ;;  %s1894_s29 = smov 46   ;;  %s1897_s15 = smov [#allocation2]  }
   0xd   :  { %s1452_s16 = sshll.u32 %s1897_s15, 4  ;;  %s1453_s16 = int_to_ptr.vmem [resolvable:$true] %s1452_s16 }
   0xe   :  { %s1856_s17 = scalar_lea.vmem %s1453_s16, 32  ;;  %p1861_p1 = scmp.lt.s32.totalorder %s1453_s16, %s1453_s16 }
   0xf   :  { %p1857_p0 = scmp.ne.s32.totalorder %s1453_s16, %s1856_s17  ;;  %p1862_p2 = scmp.lt.s32.totalorder %s1856_s17, %s1856_s17 }
  0x10   :  { %1546 = vrot.lane.b32.xlu1 %v1525_v6, %s1881_s12  ;;  %1541 = vrot.lane.b32.xlu0 %v1955_v3, %s1881_s12 }
  0x11   :  { %p1863_p3 = por %p1862_p2, %p1861_p1 }
  0x13   :  { %p1864_p4 = pnand %p1863_p3, %p1857_p0 }
  0x14   :  { %1556 = vrot.lane.b32.xlu1 %v1525_v6, %s1882_s13  ;;  %1551 = vrot.lane.b32.xlu0 %v1955_v3, %s1882_s13 }
  0x18   :  { %1566 = vrot.lane.b32.xlu1 %v1525_v6, %s1883_s14  ;;  %1561 = vrot.lane.b32.xlu0 %v1955_v3, %s1883_s14 }
  0x1c   :  { %1576 = vrot.lane.b32.xlu1 %v1525_v6, %s1884_s19  ;;  %1571 = vrot.lane.b32.xlu0 %v1955_v3, %s1884_s19 }
  0x20   :  { %1586 = vrot.lane.b32.xlu1 %v1955_v3, %s1885_s20  ;;  %1581 = vrot.lane.b32.xlu0 %v1580_v10, %s1879_s10 }
  0x24   :  { %1596 = vrot.lane.b32.xlu1 %v1580_v10, %s1878_s9  ;;  %1591 = vrot.lane.b32.xlu0 %v1525_v6, %s1885_s20 }
  0x28   :  { %1606 = vrot.lane.b32.xlu1 %v1580_v10, %s1881_s12  ;;  %1601 = vrot.lane.b32.xlu0 %v1580_v10, %s1880_s11 }
  0x2c   :  { %1616 = vrot.lane.b32.xlu1 %v1580_v10, %s1883_s14  ;;  %1611 = vrot.lane.b32.xlu0 %v1580_v10, %s1882_s13 }
  0x30   :  { %1626 = vrot.lane.b32.xlu1 %v1955_v3, %s1886_s21  ;;  %1621 = vrot.lane.b32.xlu0 %v1580_v10, %s1884_s19 }
  0x34   :  { %1636 = vrot.lane.b32.xlu1 %v1580_v10, %s1885_s20  ;;  %1631 = vrot.lane.b32.xlu0 %v1955_v3, %s1887_s22 }
  0x38   :  { %1646 = vrot.lane.b32.xlu1 %v1645_v11, %s1887_s22  ;;  %1641 = vrot.lane.b32.xlu0 %v1645_v11, %s1886_s21 }
  0x3c   :  { %1656 = vrot.lane.b32.xlu1 %v1955_v3, %s1888_s23  ;;  %1651 = vrot.lane.b32.xlu0 %v1955_v3, %s1889_s24 }
  0x40   :  { %1666 = vrot.lane.b32.xlu1 %v1645_v11, %s1888_s23  ;;  %1661 = vrot.lane.b32.xlu0 %v1645_v11, %s1889_s24 }
  0x44   :  { %1676 = vrot.lane.b32.xlu1 %v1955_v3, %s1890_s25  ;;  %1671 = vrot.lane.b32.xlu0 %v1955_v3, %s1891_s26 }
  0x48   :  { %1686 = vrot.lane.b32.xlu1 %v1645_v11, %s1890_s25  ;;  %1681 = vrot.lane.b32.xlu0 %v1645_v11, %s1891_s26 }
  0x4c   :  { %360 = vrot.lane.b32.xlu1 %v1980_v8, %s1886_s21  ;;  %1691 = vrot.lane.b32.xlu0 %v1955_v3, %s1892_s27 }
  0x50   :  { %1696 = vrot.lane.b32.xlu1 %v1645_v11, %s1892_s27  ;;  %384 = vrot.lane.b32.xlu0 %v1980_v8, %s1887_s22 }
  0x54   :  { %336 = vrot.lane.b32.xlu1 %v1980_v8, %s1888_s23  ;;  %312 = vrot.lane.b32.xlu0 %v1980_v8, %s1889_s24 }
  0x58   :  { %264 = vrot.lane.b32.xlu1 %v1980_v8, %s1891_s26  ;;  %1701 = vrot.lane.b32.xlu0 %v1955_v3, %s1893_s28 }
  0x5c   :  { %1706 = vrot.lane.b32.xlu1 %v1645_v11, %s1893_s28  ;;  %288 = vrot.lane.b32.xlu0 %v1980_v8, %s1890_s25 }
  0x60   :  { %120 = vrot.lane.b32.xlu1 %v1980_v8, %s1893_s28  ;;  %240 = vrot.lane.b32.xlu0 %v1980_v8, %s1892_s27 }
  0x76   :  { %v1522_v12 = vpop.permute.xlu1 %1521  ;;  %v1512_v13 = vpop.permute.xlu0 %1511 }
  0x77   :  { %v1524_v14 = vunpack.i.h.bf16 %v1522_v12  ;;  %v1523_v15 = vunpack.i.l.bf16 %v1522_v12  ;;  %v1514_v16 = vunpack.i.h.bf16 %v1512_v13  ;;  %v1513_v17 = vunpack.i.l.bf16 %v1512_v13 }
  0x79   :  { %v2042_v22 = vsel %vm172_vm0, %v1523_v15, %v1524_v14  ;;  %v2052_v26 = vsel %vm220_vm1, %v1513_v17, %v1514_v16 }
  0x7a   :  { %v2035_v18 = vpop.permute.xlu1 %1526  ;;  %v2037_v19 = vpop.permute.xlu0 %1516 }
  0x7b   :  { %v1519_v20 = vunpack.i.h.bf16 %v2037_v19  ;;  %v1518_v21 = vunpack.i.l.bf16 %v2037_v19  ;;  %v1529_v23 = vunpack.i.h.bf16 %v2035_v18  ;;  %v1528_v24 = vunpack.i.l.bf16 %v2035_v18 }
  0x7d   :  { %v2049_v25 = vsel %vm220_vm1, %v1518_v21, %v1519_v20  ;;  %v2055_v27 = vsel %vm220_vm1, %v1514_v16, %v1518_v21  ;;  %v2068_v36 = vsel %vm172_vm0, %v1529_v23, %v1523_v15  ;;  %v2078_v38 = vsel %vm172_vm0, %v1524_v14, %v1528_v24 }
  0x7e   :  { %v2057_v28 = vpop.permute.xlu1 %1536  ;;  %v1532_v29 = vpop.permute.xlu0 %1531  ;;  %v1715_v30 = vpack.i.bf16 %v2042_v22, %v2049_v25  ;;  %v1710_v31 = vpack.i.bf16 %v2055_v27, %v2052_v26 }
  0x7f   :  { %v1539_v32 = vunpack.i.h.bf16 %v2057_v28  ;;  %v1538_v33 = vunpack.i.l.bf16 %v2057_v28  ;;  %v1534_v34 = vunpack.i.h.bf16 %v1532_v29  ;;  %v1533_v35 = vunpack.i.l.bf16 %v1532_v29 }
  0x80   :  { %1716 = vrot.lane.b32.xlu1 %v1715_v30, %s1894_s29  ;;  %1711 = vrot.lane.b32.xlu0 %v1710_v31, %s1894_s29 }
  0x81   :  { %v2073_v37 = vsel %vm196_vm2, %v1534_v34, %v1538_v33  ;;  %v2081_v39 = vsel %vm196_vm2, %v1533_v35, %v1534_v34  ;;  %v2084_v40 = vsel %vm196_vm2, %v1539_v32, %v1533_v35 }
  0x82   :  { %v2086_v41 = vpop.permute.xlu1 %1546  ;;  %v1542_v42 = vpop.permute.xlu0 %1541  ;;  %v1725_v43 = vpack.i.bf16 %v2068_v36, %v2073_v37  ;;  %v1720_v44 = vpack.i.bf16 %v2081_v39, %v2078_v38 }
  0x83   :  { %v1544_v48 = vunpack.i.h.bf16 %v1542_v42  ;;  %v1543_v49 = vunpack.i.l.bf16 %v1542_v42  ;;  %v1549_v56 = vunpack.i.h.bf16 %v2086_v41  ;;  %v1548_v57 = vunpack.i.l.bf16 %v2086_v41 }
  0x84   :  { %1726 = vrot.lane.b32.xlu1 %v1725_v43, %s1894_s29  ;;  %1721 = vrot.lane.b32.xlu0 %v1720_v44, %s1894_s29 }
  0x85   :  { %v2107_v58 = vsel %vm148_vm3, %v1543_v49, %v1544_v48  ;;  %v2125_v12 = vsel %vm148_vm3, %v1549_v56, %v1543_v49  ;;  %v2130_v13 = vsel %vm148_vm3, %v1544_v48, %v1548_v57 }
  0x86   :  { %v2100_v50 = vpop.permute.xlu1 %1556  ;;  %v1552_v51 = vpop.permute.xlu0 %1551 }
  0x87   :  { %v1559_v52 = vunpack.i.h.bf16 %v2100_v50  ;;  %v1558_v53 = vunpack.i.l.bf16 %v2100_v50  ;;  %v1554_v54 = vunpack.i.h.bf16 %v1552_v51  ;;  %v1553_v55 = vunpack.i.l.bf16 %v1552_v51 }
  0x89   :  { %v415_v59 = vsel %vm412_vm4, %v1554_v54, %v1558_v53  ;;  %v414_v60 = vsel %vm412_vm4, %v1553_v55, %v1554_v54  ;;  %v413_v7 = vsel %vm412_vm4, %v1559_v52, %v1553_v55 }
  0x8a   :  { %v2113_v61 = vpop.permute.xlu1 %1566  ;;  %v1562_v62 = vpop.permute.xlu0 %1561  ;;  %v1735_v63 = vpack.i.bf16 %v2107_v58, %v415_v59  ;;  %v1730_v3 = vpack.i.bf16 %v414_v60, %v2084_v40  ;;  %v1740_v17 = vpack.i.bf16 %v413_v7, %v2130_v13 }
  0x8b   :  { %v1564_v4 = vunpack.i.h.bf16 %v1562_v62  ;;  %v1563_v6 = vunpack.i.l.bf16 %v1562_v62  ;;  %v1568_v10 = vunpack.i.l.bf16 %v2113_v61  ;;  %v1569_v30 = vunpack.i.h.bf16 %v2113_v61 }
  0x8c   :  { %1736 = vrot.lane.b32.xlu1 %v1735_v63, %s1894_s29  ;;  %1731 = vrot.lane.b32.xlu0 %v1730_v3, %s1894_s29 }
  0x8d   :  { %v2122_v11 = vsel %vm76_vm5, %v1563_v6, %v1564_v4  ;;  %v2144_v31 = vsel %vm76_vm5, %v1564_v4, %v1568_v10  ;;  %v2170_v59 = vsel %vm76_vm5, %v1569_v30, %v1563_v6 }
  0x8e   :  { %v2132_v14 = vpop.permute.xlu1 %1576  ;;  %v1572_v15 = vpop.permute.xlu0 %1571  ;;  %v1745_v16 = vpack.i.bf16 %v2122_v11, %v2125_v12  ;;  %3184 = vst [vmem:[#allocation6_spill] sm:$0xff] %v2144_v31 }
  0x8f   :  { %v3162_v21 = vunpack.i.l.bf16 %v2132_v14  ;;  %v1574_v23 = vunpack.i.h.bf16 %v1572_v15  ;;  %v1573_v29 = vunpack.i.l.bf16 %v1572_v15  ;;  %v1579_v35 = vunpack.i.h.bf16 %v2132_v14 }
  0x90   :  { %1746 = vrot.lane.b32.xlu1 %v1745_v16, %s1894_s29  ;;  %1741 = vrot.lane.b32.xlu0 %v1740_v17, %s1894_s29 }
  0x91   :  { %v2147_v32 = vsel %vm100_vm6, %v1573_v29, %v1574_v23  ;;  %v2152_v34 = vsel %vm100_vm6, %v1574_v23, %v3162_v21  ;;  %v2189_v15 = vsel %vm100_vm6, %v1579_v35, %v1573_v29 }
  0x92   :  { %v1587_v42 = vpop.permute.xlu1 %1586  ;;  %v1582_v43 = vpop.permute.xlu0 %1581  ;;  %v1750_v44 = vpack.i.bf16 %v2147_v32, %v2144_v31  ;;  %v1765_v30 = vpack.i.bf16 %v1941_v0, %v2189_v15 }
  0x93   :  { %v1589_v49 = vunpack.i.h.bf16 %v1587_v42  ;;  %v1588_v51 = vunpack.i.l.bf16 %v1587_v42  ;;  %v2159_v52 = vunpack.i.h.bf16 %v1582_v43  ;;  %v1583_v54 = vunpack.i.l.bf16 %v1582_v43 }
  0x94   :  { %1751 = vrot.lane.b32.xlu0 %v1750_v44, %s1894_s29 }
  0x95   :  { %v2167_v56 = vsel %vm220_vm1, %v1519_v20, %v1583_v54  ;;  %v2174_v60 = vsel %vm220_vm1, %v1583_v54, %v2159_v52  ;;  %v2177_v62 = vsel %vm52_vm7, %v1588_v51, %v1589_v49  ;;  %vm756_vm1 = vcmask 1043456  }
  0x96   :  { %3185 = vst [vmem:[#allocation7_spill] sm:$0xff] %v2174_v60  ;;  %v1597_v63 = vpop.permute.xlu1 %1596  ;;  %v2179_v3 = vpop.permute.xlu0 %1591  ;;  %v1755_v4 = vpack.i.bf16 %v2167_v56, %v2152_v34  ;;  %v1760_v19 = vpack.i.bf16 %v2170_v59, %v2174_v60  ;;  %v1770_v16 = vpack.i.bf16 %v2177_v62, %v1946_v1 }
  0x97   :  { %v2185_v20 = vunpack.i.h.bf16 %v1597_v63  ;;  %v1598_v6 = vunpack.i.l.bf16 %v1597_v63  ;;  %v3161_v7 = vunpack.i.l.bf16 %v2179_v3  ;;  %v1594_v54 = vunpack.i.h.bf16 %v2179_v3 }
  0x98   :  { %1756 = vrot.lane.b32.xlu1 %v1755_v4, %s1894_s29  ;;  %1761 = vrot.lane.b32.xlu0 %v1760_v19, %s1894_s29 }
  0x99   :  { %3186 = vst [vmem:[#allocation8_spill] sm:$0xff] %v2185_v20  ;;  %v2200_v42 = vsel %vm52_vm7, %v1589_v49, %v3161_v7  ;;  %v2207_v35 = vsel %vm172_vm0, %v1528_v24, %v1598_v6  ;;  %v2211_v44 = vsel %vm172_vm0, %v1598_v6, %v2185_v20  ;;  %vm526_vm0 = vcmask 375808  }
  0x9a   :  { %v1607_v17 = vpop.permute.xlu1 %1606  ;;  %v1602_v23 = vpop.permute.xlu0 %1601  ;;  %3187 = vst [vmem:[#allocation9_spill] sm:$0xff] %v2200_v42  ;;  %3188 = vst [vmem:[#allocation10_spill] sm:$0xff] %v2211_v44  ;;  %v1775_v19 = vpack.i.bf16 %v2207_v35, %v2200_v42 }
  0x9b   :  { %v2202_v43 = vunpack.i.h.bf16 %v1602_v23  ;;  %v1603_v29 = vunpack.i.l.bf16 %v1602_v23  ;;  %v2216_v49 = vunpack.i.h.bf16 %v1607_v17  ;;  %v1608_v28 = vunpack.i.l.bf16 %v1607_v17 }
  0x9c   :  { %1766 = vrot.lane.b32.xlu1 %v1765_v30, %s1894_s29  ;;  %1771 = vrot.lane.b32.xlu0 %v1770_v16, %s1894_s29  ;;  %v2249_v17 = vsel %vm52_vm7, %v1594_v54, %v1588_v51 }
  0x9d   :  { %v2221_v63 = vsel %vm196_vm2, %v1538_v33, %v1603_v29  ;;  %v2225_v18 = vsel %vm196_vm2, %v1603_v29, %v2202_v43  ;;  %v2242_v29 = vld [vmem:[%s3153_s1 + $0x4] ss:$8 sps:$4 sm:$0xff]   ;;  %v2284_v61 = vsel %vm148_vm3, %v1548_v57, %v1608_v28  ;;  %vm1164_vm2 = vcmask 261120  }
  0x9e   :  { %3189 = vst [vmem:[#allocation11_spill] sm:$0xff] %v2225_v18  ;;  %v1617_v24 = vpop.permute.xlu1 %1616  ;;  %v2227_v4 = vpop.permute.xlu0 %1611  ;;  %v1780_v6 = vpack.i.bf16 %v2221_v63, %v2211_v44  ;;  %3190 = vst [vmem:[#allocation12_spill] sm:$0xff] %v2242_v29  ;;  %v1785_v46 = vpack.i.bf16 %v1951_v2, %v2225_v18  ;;  %1465 = vmatprep.mubr.msk.bf16.mxu0 %vm316_vm8, %v2242_v29  ;;  %1468 = vmatprep.mubr.msk.bf16.mxu1 %vm316_vm8, %v2242_v29 }
  0x9f   :  { %v1618_v23 = vunpack.i.l.bf16 %v1617_v24  ;;  %v3160_v33 = vunpack.i.h.bf16 %v2227_v4  ;;  %v1613_v30 = vunpack.i.l.bf16 %v2227_v4  ;;  %v2246_v16 = vunpack.i.h.bf16 %v1617_v24 }
  0xa0   :  { %1776 = vrot.lane.b32.xlu1 %v1775_v19, %s1894_s29  ;;  %1781 = vrot.lane.b32.xlu0 %v1780_v6, %s1894_s29  ;;  %v2256_v6 = vsel %vm148_vm3, %v1608_v28, %v2216_v49 }
  0xa1   :  { %v416_v19 = vsel %vm412_vm4, %v1558_v53, %v1613_v30  ;;  %3191 = vst [vmem:[#allocation13_spill] sm:$0xff] %v2256_v6  ;;  %v417_v51 = vsel %vm412_vm4, %v1613_v30, %v3160_v33  ;;  %v2269_v50 = vsel %vm76_vm5, %v1568_v10, %v1618_v23  ;;  %v2288_v10 = vsel %vm76_vm5, %v1618_v23, %v2246_v16 }
  0xa2   :  { %v2258_v47 = vpop.permute.xlu1 %1626  ;;  %v1622_v48 = vpop.permute.xlu0 %1621  ;;  %v1790_v24 = vpack.i.bf16 %v416_v19, %v2249_v17  ;;  %3192 = vst [vmem:[#allocation14_spill] sm:$0xff] %v2288_v10  ;;  %vm1101_vm4 = vcmask 162816   ;;  %vm1340_vm5 = vcmask 7168  }
  0xa3   :  { %v3164_v53 = vunpack.i.h.bf16 %v2258_v47  ;;  %v1628_v54 = vunpack.i.l.bf16 %v2258_v47  ;;  %v2275_v55 = vunpack.i.h.bf16 %v1622_v48  ;;  %v1623_v45 = vunpack.i.l.bf16 %v1622_v48 }
  0xa4   :  { %1786 = vrot.lane.b32.xlu1 %v1785_v46, %s1894_s29  ;;  %1791 = vrot.lane.b32.xlu0 %v1790_v24, %s1894_s29  ;;  %v1795_v46 = vpack.i.bf16 %v2284_v61, %v417_v51  ;;  %v1800_v24 = vpack.i.bf16 %v2269_v50, %v2256_v6 }
  0xa5   :  { %v2292_v48 = vsel %vm100_vm6, %v1623_v45, %v2275_v55  ;;  %v366_v23 = vsel %vm364_vm9, %v1628_v54, %v3164_v53 }
  0xa6   :  { %3193 = vst [vmem:[#allocation15_spill] sm:$0xff] %v2292_v48  ;;  %v1637_v30 = vpop.permute.xlu1 %1636  ;;  %v2294_v19 = vpop.permute.xlu0 %1631  ;;  %v1810_v51 = vpack.i.bf16 %v1962_v5, %v2292_v48 }
  0xa7   :  { %v3165_v57 = vunpack.i.h.bf16 %v2294_v19  ;;  %v1633_v28 = vunpack.i.l.bf16 %v2294_v19 }
  0xa8   :  { %1796 = vrot.lane.b32.xlu1 %v1795_v46, %s1894_s29  ;;  %1801 = vrot.lane.b32.xlu0 %v1800_v24, %s1894_s29  ;;  %v3194_v46 = vunpack.i.l.bf16 %v2132_v14 }
  0xa9   :  { %v390_v41 = vsel %vm388_vm10, %v1633_v28, %v3165_v57  ;;  %v1638_v57 = vunpack.i.l.bf16 %v1637_v30 }
  0xaa   :  { %v2313_v33 = vpop.permute.xlu1 %1646  ;;  %v2315_v7 = vpop.permute.xlu0 %1641  ;;  %v673_v21 = vpack.c.bf16 %v390_v41, %v366_v23  ;;  %v2322_v24 = vsel %vm100_vm6, %v3194_v46, %v1623_v45  ;;  %vm1345_vm6 = vcmask 15360  }
  0xab   :  { %v1648_v6 = vunpack.i.l.bf16 %v2313_v33  ;;  %v1643_v53 = vunpack.i.l.bf16 %v2315_v7  ;;  %v1805_v45 = vpack.i.bf16 %v2322_v24, %v2288_v10 }
  0xac   :  { %362 = vrot.lane.b32.xlu1 %v1985_v9, %s1886_s21  ;;  %386 = vrot.lane.b32.xlu0 %v1985_v9, %s1887_s22 }
  0xad   :  { %775 = vmatprep.subr.bf16.mxu0 %v673_v21  ;;  %v365_v41 = vsel %vm364_vm9, %v1643_v53, %v1628_v54  ;;  %v389_v23 = vsel %vm388_vm10, %v1648_v6, %v1633_v28  ;;  %v2350_v28 = vunpack.i.h.bf16 %v1637_v30 }
  0xae   :  { %v2332_v44 = vpop.permute.xlu1 %1656  ;;  %v2334_v14 = vpop.permute.xlu0 %1651  ;;  %v672_v46 = vpack.c.bf16 %v389_v23, %v365_v41 }
  0xaf   :  { %v3171_v18 = vunpack.i.h.bf16 %v2332_v44  ;;  %v1658_v60 = vunpack.i.l.bf16 %v2332_v44  ;;  %v3172_v21 = vunpack.i.h.bf16 %v2334_v14  ;;  %v1653_v53 = vunpack.i.l.bf16 %v2334_v14 }
  0xb0   :  { %1806 = vrot.lane.b32.xlu1 %v1805_v45, %s1894_s29  ;;  %1811 = vrot.lane.b32.xlu0 %v1810_v51, %s1894_s29 }
  0xb1   :  { %776 = vmatpush1.bf16.msra.mxu0 %v672_v46  ;;  %v318_v6 = vsel %vm316_vm8, %v1653_v53, %v3172_v21  ;;  %v342_v54 = vsel %vm340_vm11, %v1658_v60, %v3171_v18  ;;  %v3195_v46 = vunpack.i.l.bf16 %v2179_v3 }
  0xb2   :  { %v2352_v41 = vpop.permute.xlu1 %1666  ;;  %v2354_v23 = vpop.permute.xlu0 %1661  ;;  %v667_v10 = vpack.c.bf16 %v342_v54, %v318_v6 }
  0xb3   :  { %v1668_v45 = vunpack.i.l.bf16 %v2352_v41  ;;  %v1663_v51 = vunpack.i.l.bf16 %v2354_v23  ;;  %v2361_v48 = vsel %vm52_vm7, %v3195_v46, %v1638_v57  ;;  %v2377_v46 = vsel %vm52_vm7, %v1638_v57, %v2350_v28 }
  0xb4   :  { %314 = vrot.lane.b32.xlu1 %v1985_v9, %s1889_s24  ;;  %338 = vrot.lane.b32.xlu0 %v1985_v9, %s1888_s23  ;;  %v1815_v3 = vpack.i.bf16 %v2361_v48, %v1980_v8  ;;  %3196 = vst [vmem:[#allocation16_spill] sm:$0xff] %v2377_v46  ;;  %vm1350_vm7 = vcmask 23552  }
  0xb5   :  { %777 = vmatprep.subr.bf16.mxu0 %v667_v10  ;;  %v317_v30 = vsel %vm316_vm8, %v1663_v51, %v1653_v53  ;;  %v341_v6 = vsel %vm340_vm11, %v1668_v45, %v1658_v60 }
  0xb6   :  { %v2369_v54 = vpop.permute.xlu1 %1676  ;;  %v2371_v18 = vpop.permute.xlu0 %1671  ;;  %v666_v21 = vpack.c.bf16 %v341_v6, %v317_v30 }
  0xb7   :  { %v3174_v10 = vunpack.i.h.bf16 %v2369_v54  ;;  %v1678_v53 = vunpack.i.l.bf16 %v2369_v54  ;;  %v3175_v60 = vunpack.i.h.bf16 %v2371_v18  ;;  %v1673_v45 = vunpack.i.l.bf16 %v2371_v18 }
  0xb8   :  { %1816 = vrot.lane.b32.xlu1 %v1815_v3, %s1894_s29  ;;  %438 = vrot.lane.b32.xlu0 %v2377_v46, %s1894_s29  ;;  %v1644_v46 = vunpack.i.h.bf16 %v2315_v7 }
  0xb9   :  { %778 = vmatpush1.bf16.msra.mxu0 %v666_v21  ;;  %v270_v8 = vsel %vm268_vm12, %v1673_v45, %v3175_v60  ;;  %v294_v57 = vsel %vm292_vm13, %v1678_v53, %v3174_v10  ;;  %v1649_v60 = vunpack.i.h.bf16 %v2313_v33 }
  0xba   :  { %v2392_v51 = vpop.permute.xlu1 %1686  ;;  %v2394_v30 = vpop.permute.xlu0 %1681  ;;  %v661_v6 = vpack.c.bf16 %v294_v57, %v270_v8 }
  0xbb   :  { %v1688_v29 = vunpack.i.l.bf16 %v2392_v51  ;;  %v1683_v3 = vunpack.i.l.bf16 %v2394_v30 }
  0xbc   :  { %266 = vrot.lane.b32.xlu1 %v1985_v9, %s1891_s26  ;;  %290 = vrot.lane.b32.xlu0 %v1985_v9, %s1890_s25 }
  0xbd   :  { %779 = vmatprep.subr.bf16.mxu0 %v661_v6  ;;  %v269_v21 = vsel %vm268_vm12, %v1683_v3, %v1673_v45  ;;  %v293_v10 = vsel %vm292_vm13, %v1688_v29, %v1678_v53  ;;  %v1669_v6 = vunpack.i.h.bf16 %v2352_v41  ;;  %v1664_v45 = vunpack.i.h.bf16 %v2354_v23 }
  0xbe   :  { %v2406_v8 = vpop.permute.xlu1 %360  ;;  %v2408_v57 = vpop.permute.xlu0 %1691  ;;  %v660_v42 = vpack.c.bf16 %v293_v10, %v269_v21  ;;  %v3198_v23 = vunpack.i.h.bf16 %v2258_v47  ;;  %v3199_v3 = vunpack.i.h.bf16 %v2294_v19  ;;  %v3200_v47 = vunpack.i.h.bf16 %v2334_v14 }
  0xbf   :  { %3197 = vst [vmem:[#allocation17_spill] sm:$0xff] %v2406_v8  ;;  %v3180_v1 = vunpack.i.h.bf16 %v2408_v57  ;;  %v1693_v31 = vunpack.i.l.bf16 %v2408_v57  ;;  %v368_v33 = vsel %vm364_vm9, %v1644_v46, %v2406_v8  ;;  %v3201_v19 = vunpack.i.h.bf16 %v2332_v44 }
  0xc0   :  { %242 = vrot.lane.b32.xlu1 %v1985_v9, %s1892_s27  ;;  %122 = vrot.lane.b32.xlu0 %v1985_v9, %s1893_s28  ;;  %v367_v53 = vsel %vm364_vm9, %v3198_v23, %v1644_v46  ;;  %v319_v46 = vsel %vm316_vm8, %v3200_v47, %v1664_v45  ;;  %v3206_v47 = vunpack.i.h.bf16 %v2369_v54 }
  0xc1   :  { %780 = vmatpush1.bf16.msra.mxu0 %v660_v42  ;;  %v246_v7 = vsel %vm244_vm14, %v1693_v31, %v3180_v1  ;;  %v391_v42 = vsel %vm388_vm10, %v3199_v3, %v1649_v60  ;;  %v1820_v1 = vpack.i.bf16 %v2202_v43, %v2185_v20 }
  0xc2   :  { %v2423_v29 = vpop.permute.xlu1 %1696  ;;  %v2425_v10 = vpop.permute.xlu0 %384  ;;  %v655_v41 = vpack.c.bf16 %v246_v7, %v2055_v27  ;;  %v343_v7 = vsel %vm340_vm11, %v3201_v19, %v1669_v6  ;;  %v674_v23 = vpack.c.bf16 %v391_v42, %v367_v53  ;;  %v1689_v53 = vunpack.i.h.bf16 %v2392_v51 }
  0xc3   :  { %v1698_v21 = vunpack.i.l.bf16 %v2423_v29  ;;  %v392_v8 = vsel %vm388_vm10, %v1649_v60, %v2425_v10  ;;  %v1684_v42 = vunpack.i.h.bf16 %v2394_v30 }
  0xc4   :  { %524 = vrot.lane.b32.xlu1 %v2159_v52, %s1894_s29  ;;  %781 = vmatprep.subr.bf16.mxu0 %v655_v41  ;;  %v675_v27 = vpack.c.bf16 %v392_v8, %v368_v33  ;;  %v3202_v8 = vunpack.i.h.bf16 %v2227_v4  ;;  %v668_v41 = vpack.c.bf16 %v343_v7, %v319_v46  ;;  %v295_v46 = vsel %vm292_vm13, %v3206_v47, %v1689_v53 }
  0xc5   :  { %1821 = vrot.lane.b32.xlu0 %v1820_v1, %s1894_s29  ;;  %v245_v3 = vsel %vm244_vm14, %v1698_v21, %v1693_v31  ;;  %v1830_v31 = vpack.i.bf16 %v2275_v55, %v2246_v16  ;;  %v1835_v21 = vpack.i.bf16 %v2350_v28, %v1985_v9  ;;  %v1699_v7 = vunpack.i.h.bf16 %v2423_v29 }
  0xc6   :  { %v2449_v20 = vpop.permute.xlu1 %336  ;;  %v2451_v60 = vpop.permute.xlu0 %312  ;;  %828 = vmatprep.subr.bf16.mxu1 %v675_v27  ;;  %v1825_v14 = vpack.i.bf16 %v2216_v49, %v3202_v8  ;;  %v654_v33 = vpack.c.bf16 %v245_v3, %v2052_v26  ;;  %v3203_v26 = vpack.c.bf16 %v2081_v39, %v2042_v22  ;;  %v3204_v27 = vpack.c.bf16 %v2084_v40, %v2068_v36 }
  0xc7   :  { %v344_v44 = vsel %vm340_vm11, %v1669_v6, %v2449_v20  ;;  %v320_v1 = vsel %vm316_vm8, %v1664_v45, %v2451_v60  ;;  %829 = vmatpush1.bf16.msra.mxu1 %v674_v23  ;;  %v3205_v22 = vunpack.i.h.bf16 %v2371_v18  ;;  %v3207_v29 = vunpack.i.h.bf16 %v2408_v57 }
  0xc8   :  { %1826 = vrot.lane.b32.xlu1 %v1825_v14, %s1894_s29  ;;  %782 = vmatpush1.bf16.msra.mxu0 %v654_v33  ;;  %v669_v4 = vpack.c.bf16 %v344_v44, %v320_v1  ;;  %v636_v57 = vpack.c.bf16 %v2189_v15, %v2170_v59  ;;  %v3209_v59 = vpack.c.bf16 %v2073_v37, %v2078_v38  ;;  %v3213_v37 = vld [vmem:[#allocation9_spill] sm:$0xff] }
  0xc9   :  { %1831 = vrot.lane.b32.xlu0 %v1830_v31, %s1894_s29  ;;  %783 = vmatprep.subr.bf16.mxu0 %v3203_v26  ;;  %v271_v39 = vsel %vm268_vm12, %v3205_v22, %v1684_v42  ;;  %v247_v1 = vsel %vm244_vm14, %v3207_v29, %v1699_v7 }
  0xca   :  { %v2470_v6 = vpop.permute.xlu1 %264  ;;  %v1702_v45 = vpop.permute.xlu0 %1701  ;;  %830 = vmatprep.subr.bf16.mxu1 %v669_v4  ;;  %v662_v8 = vpack.c.bf16 %v295_v46, %v271_v39  ;;  %v651_v4 = vpack.c.bf16 %v2221_v63, %v2207_v35  ;;  %v3212_v63 = vld [vmem:[#allocation5_spill] sm:$0xff] }
  0xcb   :  { %v1704_v51 = vunpack.i.h.bf16 %v1702_v45  ;;  %v1703_v30 = vunpack.i.l.bf16 %v1702_v45  ;;  %831 = vmatpush1.bf16.msra.mxu1 %v668_v41  ;;  %v272_v9 = vsel %vm268_vm12, %v1684_v42, %v2470_v6  ;;  %v3208_v42 = vpack.c.bf16 %v2147_v32, %v2122_v11 }
  0xcc   :  { %1836 = vrot.lane.b32.xlu1 %v1835_v21, %s1894_s29  ;;  %784 = vmatpush1.bf16.msra.mxu0 %v3204_v27  ;;  %v632_v38 = vpack.c.bf16 %v3213_v37, %v3212_v63 }
  0xcd   :  { %v126_v19 = vsel %vm124_vm15, %v1703_v30, %v1704_v51 }
  0xce   :  { %v1707_v23 = vpop.permute.xlu1 %1706  ;;  %v2488_v3 = vpop.permute.xlu0 %288  ;;  %v643_v36 = vpack.c.bf16 %v2107_v58, %v126_v19 }
  0xcf   :  { %v1708_v40 = vunpack.i.l.bf16 %v1707_v23  ;;  %v296_v18 = vsel %vm292_vm13, %v1689_v53, %v2488_v3  ;;  %v1709_v53 = vunpack.i.h.bf16 %v1707_v23 }
  0xd0   :  { %785 = vmatprep.subr.bf16.mxu0 %v643_v36  ;;  %v663_v54 = vpack.c.bf16 %v296_v18, %v272_v9 }
  0xd1   :  { %v125_v14 = vsel %vm124_vm15, %v1708_v40, %v1703_v30  ;;  %v127_v32 = vsel %vm124_vm15, %v1704_v51, %v1709_v53 }
  0xd2   :  { %v2494_v33 = vpop.permute.xlu0 %240  ;;  %832 = vmatprep.subr.bf16.mxu1 %v663_v54  ;;  %v642_v44 = vpack.c.bf16 %v2125_v12, %v125_v14  ;;  %v2502_v31 = vpop.permute.xlu1 %120  ;;  %v656_v12 = vpack.c.bf16 %v247_v1, %v2049_v25  ;;  %v630_v25 = vpack.c.bf16 %v2249_v17, %v1951_v2  ;;  %v644_v15 = vpack.c.bf16 %v2130_v13, %v127_v32  ;;  %v711_v13 = vld [vmem:[%s3154_s2 + $0x18] sm:$0xff]  ;;  %v710_v17 = vld [vmem:[%s3154_s2 + $0x10] sm:$0xff] }
  0xd3   :  { %v248_v58 = vsel %vm244_vm14, %v1699_v7, %v2494_v33  ;;  %833 = vmatpush1.bf16.msra.mxu1 %v662_v8  ;;  %v128_v26 = vsel %vm124_vm15, %v1709_v53, %v2502_v31  ;;  %v633_v2 = vpack.c.bf16 %v2361_v48, %v1962_v5  ;;  %v708_v5 = vld [vmem:[%s3154_s2] sm:$0xff] }
  0xd4   :  { %786 = vmatpush1.bf16.msra.mxu0 %v642_v44  ;;  %v657_v41 = vpack.c.bf16 %v248_v58, %v2167_v56  ;;  %v631_v56 = vpack.c.bf16 %v2177_v62, %v1941_v0  ;;  %v645_v11 = vpack.c.bf16 %v2284_v61, %v128_v26  ;;  %v639_v0 = vpack.c.bf16 %v2322_v24, %v2269_v50  ;;  %v3210_v62 = vld [vmem:[#allocation6_spill] sm:$0xff] }
  0xd5   :  { %787 = vmatprep.subr.bf16.mxu0 %v3208_v42  ;;  %v3211_v35 = vpack.c.bf16 %v2152_v34, %v3210_v62  ;;  %v1895_v50 = vmov 0   ;;  %v709_v34 = vld [vmem:[%s3154_s2 + $0x8] sm:$0xff] }
  0xd6   :  { %834 = vmatprep.subr.bf16.mxu1 %v657_v41  ;;  %1841 = vset.pattern.permute.xlu1 %v1895_v50 }
  0xd7   :  { %835 = vmatpush1.bf16.msra.mxu1 %v656_v12  ;;  %1840 = vset.pattern.permute.xlu0 %v1895_v50 }
  0xd8   :  { %788 = vmatpush1.bf16.msra.mxu0 %v636_v57  ;;  %836 = vmatprep.subr.bf16.mxu1 %v651_v4 }
  0xd9   :  { %789 = vmatprep.subr.bf16.mxu0 %v631_v56  ;;  %729 = vperm.xlu1 %1841, %v711_v13  }
  0xda   :  { %724 = vperm.xlu0 %1840, %v710_v17  }
  0xdb   :  { %837 = vmatpush1.bf16.msra.mxu1 %v3209_v59 }
  0xdc   :  { %790 = vmatpush1.bf16.msra.mxu0 %v630_v25  ;;  %838 = vmatprep.subr.bf16.mxu1 %v645_v11 }
  0xdd   :  { %714 = vperm.xlu1 %1841, %v708_v5  }
  0xde   :  { %719 = vperm.xlu0 %1840, %v709_v34  }
  0xdf   :  { %839 = vmatpush1.bf16.msra.mxu1 %v644_v15 }
  0xe0   :  { %840 = vmatprep.subr.bf16.mxu1 %v639_v0 }
  0xe3   :  { %841 = vmatpush1.bf16.msra.mxu1 %v3211_v35 }
  0xe4   :  { %842 = vmatprep.subr.bf16.mxu1 %v633_v2 }
  0xe7   :  { %843 = vmatpush1.bf16.msra.mxu1 %v632_v38 }
  0xf2   :  { %v2546_v61 = vpop.permute.xlu1 %1716  ;;  %v1712_v48 = vpop.permute.xlu0 %1711 }
  0xf3   :  { %v1718_v24 = vunpack.i.l.bf16 %v2546_v61  ;;  %v1714_v45 = vunpack.i.h.bf16 %v1712_v48  ;;  %v1713_v21 = vunpack.i.l.bf16 %v1712_v48  ;;  %v1719_v46 = vunpack.i.h.bf16 %v2546_v61 }
  0xf5   :  { %v568_v51 = vsel %vm526_vm0, %v1714_v45, %v1718_v24  ;;  %v567_v30 = vsel %vm526_vm0, %v1713_v21, %v1714_v45 }
  0xf6   :  { %v2551_v27 = vpop.permute.xlu1 %1726  ;;  %v2553_v22 = vpop.permute.xlu0 %1721  ;;  %v703_v39 = vpack.c.bf16 %v568_v51, %v568_v51  ;;  %v702_v47 = vpack.c.bf16 %v567_v30, %v567_v30 }
  0xf7   :  { %v1728_v9 = vunpack.i.l.bf16 %v2551_v27  ;;  %v1724_v19 = vunpack.i.h.bf16 %v2553_v22  ;;  %v1723_v7 = vunpack.i.l.bf16 %v2553_v22  ;;  %v1729_v8 = vunpack.i.h.bf16 %v2551_v27 }
  0xf8   :  { %1464 = vmatprep.subr.msk.bf16.mxu0 %vm756_vm1, %v703_v39  ;;  %v758_v23 = vsel %vm756_vm1, %v702_v47, 0 }
  0xf9   :  { %798 = vmatpush2.bf16.msra.mxu0 %v758_v23  ;;  %v558_v36 = vsel %vm526_vm0, %v1719_v46, %v1723_v7  ;;  %v563_v40 = vsel %vm526_vm0, %v1724_v19, %v1728_v9  ;;  %v557_v58 = vsel %vm526_vm0, %v1729_v8, %v1719_v46 }
  0xfa   :  { %v697_v18 = vpack.c.bf16 %v563_v40, %v558_v36 }
  0xfc   :  { %799 = vmatprep.subr.bf16.mxu0 %v697_v18 }
  0xfe   :  { %v2568_v54 = vpop.permute.xlu1 %1736  ;;  %v1732_v14 = vpop.permute.xlu0 %1731 }
  0xff   :  { %v1733_v44 = vunpack.i.l.bf16 %v1732_v14  ;;  %v1738_v29 = vunpack.i.l.bf16 %v2568_v54  ;;  %v1734_v1 = vunpack.i.h.bf16 %v1732_v14  ;;  %v1739_v57 = vunpack.i.h.bf16 %v2568_v54 }
 0x101   :  { %v562_v41 = vsel %vm526_vm0, %v1733_v44, %v1724_v19  ;;  %v548_v25 = vsel %vm526_vm0, %v1734_v1, %v1738_v29 }
 0x102   :  { %v1747_v53 = vpop.permute.xlu1 %1746  ;;  %v2573_v42 = vpop.permute.xlu0 %1741  ;;  %v696_v12 = vpack.c.bf16 %v562_v41, %v557_v58 }
 0x103   :  { %v1748_v4 = vunpack.i.l.bf16 %v1747_v53  ;;  %v1744_v26 = vunpack.i.h.bf16 %v2573_v42  ;;  %v1743_v56 = vunpack.i.l.bf16 %v2573_v42  ;;  %v1749_v35 = vunpack.i.h.bf16 %v1747_v53 }
 0x104   :  { %800 = vmatpush2.bf16.msra.mxu0 %v696_v12 }
 0x105   :  { %v553_v11 = vsel %vm526_vm0, %v1739_v57, %v1743_v56  ;;  %v547_v32 = vsel %vm526_vm0, %v1744_v26, %v1734_v1  ;;  %v552_v59 = vsel %vm526_vm0, %v1748_v4, %v1739_v57 }
 0x106   :  { %v2586_v15 = vpop.permute.xlu0 %1751  ;;  %v691_v0 = vpack.c.bf16 %v553_v11, %v548_v25  ;;  %v690_v2 = vpack.c.bf16 %v552_v59, %v547_v32 }
 0x107   :  { %v1753_v62 = vunpack.i.l.bf16 %v2586_v15  ;;  %v1754_v38 = vunpack.i.h.bf16 %v2586_v15 }
 0x108   :  { %801 = vmatprep.subr.bf16.mxu0 %v691_v0 }
 0x109   :  { %802 = vmatpush2.bf16.msra.mxu0 %v690_v2  ;;  %v538_v5 = vsel %vm526_vm0, %v1749_v35, %v1753_v62 }
 0x10a   :  { %v2589_v63 = vpop.permute.xlu1 %1756  ;;  %v2591_v37 = vpop.permute.xlu0 %1761 }
 0x10b   :  { %v1759_v13 = vunpack.i.h.bf16 %v2589_v63  ;;  %v1758_v17 = vunpack.i.l.bf16 %v2589_v63  ;;  %v1763_v50 = vunpack.i.l.bf16 %v2591_v37  ;;  %v1764_v34 = vunpack.i.h.bf16 %v2591_v37 }
 0x10d   :  { %v570_v61 = vsel %vm526_vm0, %v1759_v13, %v1763_v50  ;;  %v543_v48 = vsel %vm526_vm0, %v1754_v38, %v1758_v17  ;;  %v569_v45 = vsel %vm526_vm0, %v1718_v24, %v1759_v13  ;;  %v537_v40 = vsel %vm526_vm0, %v1764_v34, %v1749_v35 }
 0x10e   :  { %v705_v21 = vpack.c.bf16 %v570_v61, %v570_v61  ;;  %v1767_v51 = vpop.permute.xlu1 %1766  ;;  %v2608_v30 = vpop.permute.xlu0 %1771  ;;  %v685_v39 = vpack.c.bf16 %v543_v48, %v538_v5  ;;  %v704_v47 = vpack.c.bf16 %v569_v45, %v569_v45 }
 0x10f   :  { %v1768_v46 = vunpack.i.l.bf16 %v1767_v51  ;;  %v1769_v23 = vunpack.i.h.bf16 %v1767_v51  ;;  %v1773_v36 = vunpack.i.l.bf16 %v2608_v30  ;;  %v1774_v44 = vunpack.i.h.bf16 %v2608_v30  ;;  %v2658_v51 = vld [vmem:[%s3153_s1] ss:$8 sps:$4 sm:$0xff]  }
 0x110   :  { %803 = vmatprep.subr.bf16.mxu0 %v685_v39  ;;  %1467 = vmatprep.subr.msk.bf16.mxu1 %vm756_vm1, %v705_v21  ;;  %v764_v19 = vsel %vm756_vm1, %v704_v47, 0  ;;  %v2663_v39 = vld [vmem:[%s3153_s1 + $0x14] ss:$8 sps:$4 sm:$0xff]  }
 0x111   :  { %851 = vmatpush2.bf16.msra.mxu1 %v764_v19  ;;  %v542_v24 = vsel %vm526_vm0, %v1768_v46, %v1754_v38  ;;  %v528_v12 = vsel %vm526_vm0, %v1769_v23, %v1773_v36 }
 0x112   :  { %v2615_v18 = vpop.permute.xlu1 %1776  ;;  %v2617_v8 = vpop.permute.xlu0 %1781  ;;  %v684_v14 = vpack.c.bf16 %v542_v24, %v537_v40 }
 0x113   :  { %v1778_v1 = vunpack.i.l.bf16 %v2615_v18  ;;  %v1779_v58 = vunpack.i.h.bf16 %v2615_v18  ;;  %v1784_v41 = vunpack.i.h.bf16 %v2617_v8  ;;  %v1783_v53 = vunpack.i.l.bf16 %v2617_v8 }
 0x114   :  { %804 = vmatpush2.bf16.msra.mxu0 %v684_v14 }
 0x115   :  { %v533_v57 = vsel %vm526_vm0, %v1774_v44, %v1778_v1  ;;  %v560_v0 = vsel %vm526_vm0, %v1779_v58, %v1783_v53  ;;  %v559_v2 = vsel %vm526_vm0, %v1723_v7, %v1779_v58  ;;  %v564_v35 = vsel %vm526_vm0, %v1728_v9, %v1784_v41  ;;  %v3214_v58 = vld [vmem:[#allocation17_spill] sm:$0xff] }
 0x116   :  { %v2630_v4 = vpop.permute.xlu1 %1786  ;;  %v1792_v26 = vpop.permute.xlu0 %1791  ;;  %v679_v25 = vpack.c.bf16 %v533_v57, %v528_v12  ;;  %v698_v21 = vpack.c.bf16 %v564_v35, %v559_v2 }
 0x117   :  { %v1789_v11 = vunpack.i.h.bf16 %v2630_v4  ;;  %v1788_v32 = vunpack.i.l.bf16 %v2630_v4  ;;  %v1793_v59 = vunpack.i.l.bf16 %v1792_v26  ;;  %v1794_v38 = vunpack.i.h.bf16 %v1792_v26 }
 0x118   :  { %805 = vmatprep.subr.bf16.mxu0 %v679_v25 }
 0x119   :  { %v527_v13 = vsel %vm526_vm0, %v1789_v11, %v1769_v23  ;;  %v532_v5 = vsel %vm526_vm0, %v1793_v59, %v1774_v44  ;;  %v565_v34 = vsel %vm526_vm0, %v1784_v41, %v1788_v32  ;;  %v549_v19 = vsel %vm526_vm0, %v1738_v29, %v1794_v38  ;;  %v2695_v11 = vld [vmem:[%s3153_s1 + $0x10] ss:$8 sps:$4 sm:$0xff]  }
 0x11a   :  { %v2648_v61 = vpop.permute.xlu1 %1796  ;;  %v2650_v48 = vpop.permute.xlu0 %1801  ;;  %v678_v22 = vpack.c.bf16 %v532_v5, %v527_v13  ;;  %v699_v45 = vpack.c.bf16 %v565_v34, %v560_v0 }
 0x11b   :  { %v1799_v7 = vunpack.i.h.bf16 %v2648_v61  ;;  %v1798_v27 = vunpack.i.l.bf16 %v2648_v61  ;;  %v1803_v9 = vunpack.i.l.bf16 %v2650_v48  ;;  %v1804_v29 = vunpack.i.h.bf16 %v2650_v48 }
 0x11c   :  { %806 = vmatpush2.bf16.msra.mxu0 %v678_v22  ;;  %852 = vmatprep.subr.bf16.mxu1 %v699_v45 }
 0x11d   :  { %853 = vmatpush2.bf16.msra.mxu1 %v698_v21  ;;  %v550_v47 = vsel %vm526_vm0, %v1794_v38, %v1798_v27  ;;  %v555_v46 = vsel %vm526_vm0, %v1799_v7, %v1803_v9  ;;  %v554_v23 = vsel %vm526_vm0, %v1743_v56, %v1799_v7  ;;  %v539_v2 = vsel %vm526_vm0, %v1753_v62, %v1804_v29  ;;  %v3215_v62 = vld [vmem:[#allocation12_spill] sm:$0xff] }
 0x11e   :  { %v363_v40 = vpop.permute.xlu1 %362  ;;  %v387_v24 = vpop.permute.xlu0 %386  ;;  %v693_v14 = vpack.c.bf16 %v555_v46, %v550_v47  ;;  %v692_v44 = vpack.c.bf16 %v554_v23, %v549_v19 }
 0x11f   :  { %v369_v41 = vsel %vm364_vm9, %v3214_v58, %v363_v40  ;;  %v393_v12 = vsel %vm388_vm10, %v2425_v10, %v387_v24  ;;  %v677_v57 = vpack.c.bf16 %v387_v24, %v363_v40  ;;  %808 = vmatmul.mubr.bf16.vlgmr.msra.gmra.mxu0 %v2658_v51  ;;  %vm1444_vm9 = vcmask 17408  }
 0x120   :  { %v676_v54 = vpack.c.bf16 %v393_v12, %v369_v41  ;;  %854 = vmatprep.subr.bf16.mxu1 %v693_v14  ;;  %1466 = vmatprep.mubr.msk.bf16.mxu0 %vm316_vm8, %v2663_v39 }
 0x121   :  { %855 = vmatpush2.bf16.msra.mxu1 %v692_v44  ;;  %881 = vmatprep.subr.bf16.mxu0 %v677_v57 }
 0x122   :  { %v2685_v42 = vpop.permute.xlu1 %1806  ;;  %v2687_v56 = vpop.permute.xlu0 %1811  ;;  %882 = vmatpush1.bf16.msra.mxu0 %v676_v54 }
 0x123   :  { %v1809_v26 = vunpack.i.h.bf16 %v2685_v42  ;;  %v1808_v10 = vunpack.i.l.bf16 %v2685_v42  ;;  %v1813_v25 = vunpack.i.l.bf16 %v2687_v56  ;;  %v1814_v63 = vunpack.i.h.bf16 %v2687_v56 }
 0x125   :  { %v540_v59 = vsel %vm526_vm0, %v1804_v29, %v1808_v10  ;;  %v545_v0 = vsel %vm526_vm0, %v1809_v26, %v1813_v25  ;;  %v544_v35 = vsel %vm526_vm0, %v1758_v17, %v1809_v26  ;;  %v529_v19 = vsel %vm526_vm0, %v1773_v36, %v1814_v63 }
 0x126   :  { %v315_v38 = vpop.permute.xlu1 %314  ;;  %v339_v13 = vpop.permute.xlu0 %338  ;;  %v687_v5 = vpack.c.bf16 %v545_v0, %v540_v59  ;;  %v686_v34 = vpack.c.bf16 %v544_v35, %v539_v2  ;;  %v3220_v59 = vld [vmem:[#allocation10_spill] sm:$0xff]  ;;  %v3222_v2 = vld [vmem:[#allocation13_spill] sm:$0xff] }
 0x127   :  { %v321_v22 = vsel %vm316_vm8, %v2451_v60, %v315_v38  ;;  %v345_v45 = vsel %vm340_vm11, %v2449_v20, %v339_v13  ;;  %v671_v7 = vpack.c.bf16 %v339_v13, %v315_v38  ;;  %818 = vmatmul.mubr.bf16.gmra.mxu0 %v2695_v11 }
 0x128   :  { %v670_v15 = vpack.c.bf16 %v345_v45, %v321_v22  ;;  %856 = vmatprep.subr.bf16.mxu1 %v687_v5  ;;  %1471 = vmatprep.mubr.msk.bf16.mxu0 %vm316_vm8, %v3215_v62  ;;  %v3225_v22 = vld [vmem:[#allocation14_spill] sm:$0xff] }
 0x129   :  { %857 = vmatpush2.bf16.msra.mxu1 %v686_v34  ;;  %883 = vmatprep.subr.bf16.mxu0 %v671_v7  ;;  %v3224_v34 = vld [vmem:[#allocation15_spill] sm:$0xff] }
 0x12a   :  { %v2717_v17 = vpop.permute.xlu1 %1816  ;;  %v2719_v21 = vpop.permute.xlu0 %438  ;;  %884 = vmatpush1.bf16.msra.mxu0 %v670_v15  ;;  %v3226_v45 = vpack.c.bf16 %v3224_v34, %v3225_v22 }
 0x12b   :  { %v1819_v60 = vunpack.i.h.bf16 %v2717_v17  ;;  %v1818_v20 = vunpack.i.l.bf16 %v2717_v17 }
 0x12d   :  { %v530_v47 = vsel %vm526_vm0, %v1814_v63, %v1818_v20  ;;  %v535_v46 = vsel %vm526_vm0, %v1819_v60, %v2719_v21  ;;  %v534_v23 = vsel %vm526_vm0, %v1778_v1, %v1819_v60  ;;  %v3216_v1 = vld [vmem:[#allocation7_spill] sm:$0xff] }
 0x12e   :  { %v681_v40 = vpack.c.bf16 %v535_v46, %v530_v47  ;;  %v267_v24 = vpop.permute.xlu1 %266  ;;  %v291_v14 = vpop.permute.xlu0 %290  ;;  %v680_v44 = vpack.c.bf16 %v534_v23, %v529_v19 }
 0x12f   :  { %v273_v58 = vsel %vm268_vm12, %v2470_v6, %v267_v24  ;;  %v297_v41 = vsel %vm292_vm13, %v2488_v3, %v291_v14  ;;  %v665_v12 = vpack.c.bf16 %v291_v14, %v267_v24  ;;  %v3217_v3 = vld [vmem:[#allocation8_spill] sm:$0xff] }
 0x130   :  { %v664_v57 = vpack.c.bf16 %v297_v41, %v273_v58  ;;  %858 = vmatprep.subr.bf16.mxu1 %v681_v40  ;;  %v3218_v29 = vpack.c.bf16 %v2202_v43, %v3217_v3  ;;  %v3223_v43 = vpack.c.bf16 %v2275_v55, %v2246_v16  ;;  %v1855_v55 = vld [vmem:[%s3152_s0 + $0x20] sm:$0xff] }
 0x131   :  { %859 = vmatpush2.bf16.msra.mxu1 %v680_v44  ;;  %885 = vmatprep.subr.bf16.mxu0 %v665_v12  ;;  %v3227_v16 = vld [vmem:[#allocation16_spill] sm:$0xff] }
 0x132   :  { %v243_v30 = vpop.permute.xlu1 %242  ;;  %886 = vmatpush1.bf16.msra.mxu0 %v664_v57  ;;  %v123_v6 = vpop.permute.xlu0 %122  ;;  %v634_v7 = vpack.c.bf16 %v3227_v16, %v1855_v55 }
 0x133   :  { %v249_v36 = vsel %vm244_vm14, %v2494_v33, %v243_v30  ;;  %v659_v18 = vpack.c.bf16 %v243_v30, %v2159_v52  ;;  %v129_v26 = vsel %vm124_vm15, %v2502_v31, %v123_v6  ;;  %v647_v33 = vpack.c.bf16 %v2216_v49, %v123_v6  ;;  %v3219_v52 = vld [vmem:[#allocation11_spill] sm:$0xff]  ;;  %v1854_v49 = vld [vmem:[%s3152_s0 + $0x28] sm:$0xff]  ;;  %s1896_s0 = smov 20  }
 0x134   :  { %v658_v54 = vpack.c.bf16 %v249_v36, %v3216_v1  ;;  %861 = vmatmul.mubr.bf16.vlgmr.msra.gmra.mxu1 %v2658_v51  ;;  %v3221_v0 = vpack.c.bf16 %v3219_v52, %v3220_v59  ;;  %v646_v35 = vpack.c.bf16 %v3222_v2, %v129_v26  ;;  %v635_v31 = vpack.c.bf16 %v2350_v28, %v1854_v49 }
 0x135   :  { %887 = vmatprep.subr.bf16.mxu0 %v659_v18  ;;  %1469 = vmatprep.mubr.msk.bf16.mxu1 %vm316_vm8, %v2663_v39 }
 0x136   :  { %888 = vmatpush1.bf16.msra.mxu0 %v658_v54  ;;  %v525_v38 = vpop.permute.xlu1 %524 }
 0x137   :  { %889 = vmatprep.subr.bf16.mxu0 %v3218_v29  ;;  %v1822_v13 = vpop.permute.xlu0 %1821  ;;  %v571_v5 = vsel %vm526_vm0, %v1763_v50, %v525_v38  ;;  %v707_v60 = vpack.c.bf16 %v525_v38, %v525_v38 }
 0x138   :  { %v1824_v15 = vunpack.i.h.bf16 %v1822_v13  ;;  %v1823_v62 = vunpack.i.l.bf16 %v1822_v13  ;;  %v706_v63 = vpack.c.bf16 %v571_v5, %v571_v5 }
 0x13a   :  { %890 = vmatpush1.bf16.msra.mxu0 %v3221_v0  ;;  %v1827_v28 = vpop.permute.xlu1 %1826  ;;  %v566_v37 = vsel %vm526_vm0, %v1788_v32, %v1824_v15  ;;  %v561_v50 = vsel %vm526_vm0, %v1783_v53, %v1823_v62  ;;  %v701_v47 = vpack.c.bf16 %v1824_v15, %v1823_v62  ;;  %v770_v40 = vsel %vm756_vm1, %v706_v63, 0 }
 0x13b   :  { %891 = vmatprep.subr.bf16.mxu0 %v647_v33  ;;  %v1829_v46 = vunpack.i.h.bf16 %v1827_v28  ;;  %v1828_v19 = vunpack.i.l.bf16 %v1827_v28  ;;  %v1832_v23 = vpop.permute.xlu0 %1831  ;;  %v700_v24 = vpack.c.bf16 %v566_v37, %v561_v50 }
 0x13c   :  { %871 = vmatmul.mubr.bf16.gmra.mxu1 %v2695_v11  ;;  %v1833_v14 = vunpack.i.l.bf16 %v1832_v23  ;;  %v1834_v53 = vunpack.i.h.bf16 %v1832_v23 }
 0x13d   :  { %v551_v4 = vsel %vm526_vm0, %v1798_v27, %v1828_v19  ;;  %v556_v8 = vsel %vm526_vm0, %v1803_v9, %v1829_v46  ;;  %v695_v32 = vpack.c.bf16 %v1829_v46, %v1828_v19 }
 0x13e   :  { %892 = vmatpush1.bf16.msra.mxu0 %v646_v35  ;;  %v1837_v44 = vpop.permute.xlu1 %1836  ;;  %v694_v58 = vpack.c.bf16 %v556_v8, %v551_v4  ;;  %v541_v41 = vsel %vm526_vm0, %v1808_v10, %v1833_v14  ;;  %v546_v61 = vsel %vm526_vm0, %v1813_v25, %v1834_v53  ;;  %v689_v12 = vpack.c.bf16 %v1834_v53, %v1833_v14 }
 0x13f   :  { %893 = vmatprep.subr.bf16.mxu0 %v3223_v43  ;;  %v1839_v27 = vunpack.i.h.bf16 %v1837_v44  ;;  %v1838_v57 = vunpack.i.l.bf16 %v1837_v44  ;;  %v688_v48 = vpack.c.bf16 %v546_v61, %v541_v41 }
 0x141   :  { %v531_v9 = vsel %vm526_vm0, %v1818_v20, %v1838_v57  ;;  %v536_v30 = vsel %vm526_vm0, %v2719_v21, %v1839_v27  ;;  %v683_v42 = vpack.c.bf16 %v1839_v27, %v1838_v57 }
 0x142   :  { %894 = vmatpush1.bf16.msra.mxu0 %v3226_v45  ;;  %v682_v10 = vpack.c.bf16 %v536_v30, %v531_v9 }
 0x143   :  { %895 = vmatprep.subr.bf16.mxu0 %v635_v31 }
 0x146   :  { %896 = vmatpush1.bf16.msra.mxu0 %v634_v7 }
 0x147   :  { %1470 = vmatprep.subr.msk.bf16.mxu0 %vm756_vm1, %v707_v60 }
 0x14a   :  { %904 = vmatpush2.bf16.msra.mxu0 %v770_v40 }
 0x14b   :  { %905 = vmatprep.subr.bf16.mxu0 %v701_v47 }
 0x14e   :  { %906 = vmatpush2.bf16.msra.mxu0 %v700_v24 }
 0x14f   :  { %907 = vmatprep.subr.bf16.mxu0 %v695_v32 }
 0x152   :  { %908 = vmatpush2.bf16.msra.mxu0 %v694_v58 }
 0x153   :  { %909 = vmatprep.subr.bf16.mxu0 %v689_v12  ;;  %v2880_v12 = vld [vmem:[%s3155_s3 + $0x4] ss:$8 sps:$4 sm:$0xff]  }
 0x154   :  { %v2802_v56 = vpop.permute.xlu1 %729  ;;  %1477 = vmatprep.mubr.msk.bf16.mxu1 %vm1164_vm2, %v2880_v12 }
 0x155   :  { %v2804_v25 = vpop.permute.xlu0 %724 }
 0x156   :  { %910 = vmatpush2.bf16.msra.mxu0 %v688_v48 }
 0x157   :  { %911 = vmatprep.subr.bf16.mxu0 %v683_v42 }
 0x158   :  { %v2806_v17 = vpop.permute.xlu1 %714 }
 0x159   :  { %v2809_v18 = vpop.permute.xlu0 %719 }
 0x15a   :  { %912 = vmatpush2.bf16.msra.mxu0 %v682_v10 }
 0x15d   :  { %914 = vmatmul.mubr.bf16.vlgmr.msra.gmra.mxu0 %v2658_v51 }
 0x15e   :  { %1472 = vmatprep.mubr.msk.bf16.mxu0 %vm316_vm8, %v2663_v39  ;;  %vm1433_vm8 = vcmask 1040384  }
 0x165   :  { %922 = vmatmul.mubr.bf16.gmra.mxu0 %v2695_v11 }
 0x1df   :  { %v809_v20 = vpop.f32.mrf.mxu0 }
 0x1e0   :  { %v810_v21 = vadd.f32 %v809_v20, %v2806_v17 }
 0x1e1   :  { %v811_v36 = vpop.f32.mrf.mxu0 }
 0x1e2   :  { %v812_v1 = vadd.f32 %v811_v36, %v2806_v17  ;;  %v930_v39 = vmax.f32 %v810_v21, 0.0 }
 0x1e3   :  { %v813_v51 = vpop.f32.mrf.mxu0 }
 0x1e4   :  { %v814_v54 = vadd.f32 %v813_v51, %v2809_v18  ;;  %v931_v29 = vmax.f32 %v812_v1, 0.0 }
 0x1e5   :  { %v815_v6 = vpop.f32.mrf.mxu0 }
 0x1e6   :  { %v935_v11 = vmax.f32 %v814_v54, 0.0  ;;  %v816_v3 = vadd.f32 %v815_v6, %v2809_v18 }
 0x1e7   :  { %v819_v59 = vpop.f32.mrf.mxu0 }
 0x1e8   :  { %v2814_v26 = vpack.c.bf16 %v935_v11, %v930_v39  ;;  %v936_v33 = vmax.f32 %v816_v3, 0.0  ;;  %v820_v49 = vadd.f32 %v819_v59, %v2804_v25  ;;  %v1123_v59 = vld [vmem:[%s3156_s4 + $0x8] sm:$0xff] }
 0x1e9   :  { %v821_v0 = vpop.f32.mrf.mxu0 }
 0x1ea   :  { %v2816_v52 = vpack.c.bf16 %v936_v33, %v931_v29  ;;  %1044 = vrot.lane.b32.xlu0 %v2814_v26, %s1887_s22  ;;  %v940_v16 = vmax.f32 %v820_v49, 0.0  ;;  %v822_v37 = vadd.f32 %v821_v0, %v2804_v25  ;;  %v1124_v0 = vld [vmem:[%s3156_s4 + $0x10] sm:$0xff] }
 0x1eb   :  { %v823_v43 = vpop.f32.mrf.mxu0 }
 0x1ec   :  { %v824_v31 = vadd.f32 %v823_v43, %v2802_v56  ;;  %v941_v40 = vmax.f32 %v822_v37, 0.0 }
 0x1ed   :  { %v825_v62 = vpop.f32.mrf.mxu0 }
 0x1ee   :  { %1046 = vrot.lane.b32.xlu0 %v2816_v52, %s1887_s22  ;;  %v945_v7 = vmax.f32 %v824_v31, 0.0  ;;  %v826_v47 = vadd.f32 %v825_v62, %v2802_v56 }
 0x1f0   :  { %v2834_v50 = vpack.c.bf16 %v945_v7, %v940_v16  ;;  %v946_v24 = vmax.f32 %v826_v47, 0.0 }
 0x1f2   :  { %v2846_v4 = vpack.c.bf16 %v946_v24, %v941_v40 }
 0x1f4   :  { %v862_v2 = vpop.f32.mrf.mxu1 }
 0x1f5   :  { %v863_v38 = vadd.f32 %v862_v2, %v2806_v17  ;;  %v1125_v2 = vld [vmem:[%s3156_s4 + $0x18] sm:$0xff] }
 0x1f6   :  { %v2822_v35 = vpop.f32.mrf.mxu1 }
 0x1f7   :  { %v932_v22 = vmax.f32 %v863_v38, 0.0  ;;  %v865_v21 = vadd.f32 %v2822_v35, %v2806_v17 }
 0x1f8   :  { %v866_v13 = vpop.f32.mrf.mxu1 }
 0x1f9   :  { %v867_v5 = vadd.f32 %v866_v13, %v2809_v18  ;;  %v933_v11 = vmax.f32 %v865_v21, 0.0  ;;  %v1848_v21 = vld [vmem:[%s3155_s3] ss:$8 sps:$4 sm:$0xff]  }
 0x1fa   :  { %v868_v34 = vpop.f32.mrf.mxu1 }
 0x1fb   :  { %v937_v45 = vmax.f32 %v867_v5, 0.0  ;;  %v869_v9 = vadd.f32 %v868_v34, %v2809_v18 }
 0x1fc   :  { %v872_v55 = vpop.f32.mrf.mxu1 }
 0x1fd   :  { %v2828_v15 = vpack.c.bf16 %v937_v45, %v932_v22  ;;  %v873_v60 = vadd.f32 %v872_v55, %v2804_v25  ;;  %v938_v39 = vmax.f32 %v869_v9, 0.0 }
 0x1fe   :  { %v874_v63 = vpop.f32.mrf.mxu1 }
 0x1ff   :  { %1048 = vrot.lane.b32.xlu1 %v2828_v15, %s1887_s22  ;;  %v942_v19 = vmax.f32 %v873_v60, 0.0  ;;  %v875_v27 = vadd.f32 %v874_v63, %v2804_v25  ;;  %v2905_v29 = vpack.c.bf16 %v938_v39, %v933_v11 }
 0x200   :  { %v876_v28 = vpop.f32.mrf.mxu1 }
 0x201   :  { %v877_v46 = vadd.f32 %v876_v28, %v2802_v56  ;;  %v943_v36 = vmax.f32 %v875_v27, 0.0 }
 0x202   :  { %v878_v44 = vpop.f32.mrf.mxu1 }
 0x203   :  { %v947_v23 = vmax.f32 %v877_v46, 0.0  ;;  %1054 = vrot.lane.b32.xlu1 %v2834_v50, %s1887_s22  ;;  %v879_v41 = vadd.f32 %v878_v44, %v2802_v56 }
 0x205   :  { %v2840_v14 = vpack.c.bf16 %v947_v23, %v942_v19  ;;  %v948_v30 = vmax.f32 %v879_v41, 0.0 }
 0x207   :  { %1017 = vrot.lane.b32.xlu1 %v2834_v50, %s1891_s26  ;;  %1058 = vrot.lane.b32.xlu0 %v2840_v14, %s1887_s22  ;;  %v2900_v6 = vpack.c.bf16 %v948_v30, %v943_v36  ;;  %v1851_v36 = vld [vmem:[%s3155_s3 + $0x14] ss:$8 sps:$4 sm:$0xff]  }
 0x20b   :  { %1056 = vrot.lane.b32.xlu1 %v2846_v4, %s1887_s22  ;;  %1009 = vrot.lane.b32.xlu0 %v2816_v52, %s1891_s26 }
 0x20f   :  { %1011 = vrot.lane.b32.xlu1 %v2828_v15, %s1891_s26  ;;  %1021 = vrot.lane.b32.xlu0 %v2840_v14, %s1891_s26 }
 0x213   :  { %1019 = vrot.lane.b32.xlu1 %v2846_v4, %s1891_s26  ;;  %1007 = vrot.lane.b32.xlu0 %v2814_v26, %s1891_s26 }
 0x217   :  { %980 = vrot.lane.b32.xlu1 %v2834_v50, %s1881_s12  ;;  %984 = vrot.lane.b32.xlu0 %v2840_v14, %s1881_s12 }
 0x21b   :  { %982 = vrot.lane.b32.xlu1 %v2846_v4, %s1881_s12  ;;  %972 = vrot.lane.b32.xlu0 %v2816_v52, %s1881_s12 }
 0x21d   :  { %v915_v8 = vpop.f32.mrf.mxu0 }
 0x21f   :  { %v917_v32 = vpop.f32.mrf.mxu0  ;;  %974 = vrot.lane.b32.xlu1 %v2828_v15, %s1881_s12  ;;  %970 = vrot.lane.b32.xlu0 %v2814_v26, %s1881_s12 }
 0x221   :  { %v918_v53 = vpop.f32.mrf.mxu0 }
 0x222   :  { %v919_v10 = vadd.f32 %v918_v53, %v2809_v18 }
 0x223   :  { %v920_v58 = vpop.f32.mrf.mxu0  ;;  %1091 = vrot.lane.b32.xlu1 %v2834_v50, %s1896_s0  ;;  %1095 = vrot.lane.b32.xlu0 %v2840_v14, %s1896_s0 }
 0x224   :  { %v939_v18 = vmax.f32 %v919_v10, 0.0 }
 0x225   :  { %v923_v61 = vpop.f32.mrf.mxu0 }
 0x226   :  { %v924_v48 = vadd.f32 %v923_v61, %v2804_v25  ;;  %v916_v25 = vadd.f32 %v915_v8, %v2806_v17  ;;  %v1122_v17 = vld [vmem:[%s3156_s4] sm:$0xff] }
 0x227   :  { %v925_v57 = vpop.f32.mrf.mxu0  ;;  %1093 = vrot.lane.b32.xlu1 %v2846_v4, %s1896_s0  ;;  %1083 = vrot.lane.b32.xlu0 %v2816_v52, %s1896_s0 }
 0x228   :  { %v944_v51 = vmax.f32 %v924_v48, 0.0  ;;  %v934_v3 = vmax.f32 %v916_v25, 0.0 }
 0x229   :  { %v926_v42 = vpop.f32.mrf.mxu0 }
 0x22a   :  { %v927_v20 = vadd.f32 %v926_v42, %v2802_v56  ;;  %v954_v33 = vpack.c.bf16 %v939_v18, %v934_v3  ;;  %v1853_v3 = vld [vmem:[%s3155_s3 + $0x10] ss:$8 sps:$4 sm:$0xff]  }
 0x22b   :  { %v928_v1 = vpop.f32.mrf.mxu0  ;;  %1085 = vrot.lane.b32.xlu1 %v2828_v15, %s1896_s0  ;;  %1081 = vrot.lane.b32.xlu0 %v2814_v26, %s1896_s0 }
 0x22c   :  { %v949_v54 = vmax.f32 %v927_v20, 0.0 }
 0x22e   :  { %v959_v56 = vpack.c.bf16 %v949_v54, %v944_v51 }
 0x22f   :  { %1060 = vrot.lane.b32.xlu1 %v2900_v6, %s1887_s22 }
 0x230   :  { %1062 = vrot.lane.b32.xlu0 %v959_v56, %s1887_s22 }
 0x233   :  { %1050 = vrot.lane.b32.xlu1 %v2905_v29, %s1887_s22 }
 0x234   :  { %1052 = vrot.lane.b32.xlu0 %v954_v33, %s1887_s22 }
 0x237   :  { %1023 = vrot.lane.b32.xlu1 %v2900_v6, %s1891_s26 }
 0x238   :  { %1025 = vrot.lane.b32.xlu0 %v959_v56, %s1891_s26 }
 0x23b   :  { %1013 = vrot.lane.b32.xlu1 %v2905_v29, %s1891_s26 }
 0x23c   :  { %1015 = vrot.lane.b32.xlu0 %v954_v33, %s1891_s26 }
 0x23f   :  { %986 = vrot.lane.b32.xlu1 %v2900_v6, %s1881_s12 }
 0x240   :  { %988 = vrot.lane.b32.xlu0 %v959_v56, %s1881_s12 }
 0x243   :  { %976 = vrot.lane.b32.xlu1 %v2905_v29, %s1881_s12 }
 0x244   :  { %978 = vrot.lane.b32.xlu0 %v954_v33, %s1881_s12 }
 0x247   :  { %1097 = vrot.lane.b32.xlu1 %v2900_v6, %s1896_s0 }
 0x248   :  { %1099 = vrot.lane.b32.xlu0 %v959_v56, %s1896_s0 }
 0x24b   :  { %1087 = vrot.lane.b32.xlu1 %v2905_v29, %s1896_s0 }
 0x24c   :  { %1089 = vrot.lane.b32.xlu0 %v954_v33, %s1896_s0 }
 0x24f   :  { %1128 = vperm.xlu1 %1841, %v1122_v17  }
 0x250   :  { %1133 = vperm.xlu0 %1840, %v1123_v59  }
 0x253   :  { %1138 = vperm.xlu1 %1841, %v1124_v0  }
 0x254   :  { %1143 = vperm.xlu0 %1840, %v1125_v2  }
 0x25c   :  { %v1045_v35 = vpop.permute.xlu0 %1044 }
 0x260   :  { %v1047_v43 = vpop.permute.xlu0 %1046 }
 0x261   :  { %v1065_v62 = vsel %vm388_vm10, %v1045_v35, %v1047_v43 }
 0x271   :  { %v2940_v38 = vpop.permute.xlu1 %1048 }
 0x272   :  { %v1066_v55 = vsel %vm388_vm10, %v1047_v43, %v2940_v38 }
 0x275   :  { %v1055_v13 = vpop.permute.xlu1 %1054 }
 0x279   :  { %v1018_v49 = vpop.permute.xlu1 %1017  ;;  %v2942_v31 = vpop.permute.xlu0 %1058 }
 0x27d   :  { %v1057_v5 = vpop.permute.xlu1 %1056  ;;  %v1010_v34 = vpop.permute.xlu0 %1009 }
 0x27e   :  { %v1069_v22 = vsel %vm388_vm10, %v1055_v13, %v1057_v5  ;;  %v1070_v45 = vsel %vm388_vm10, %v1057_v5, %v2942_v31 }
 0x27f   :  { %1171 = vmatprep.subr.bf16.mxu1 %v1070_v45 }
 0x280   :  { %1172 = vmatpush1.bf16.msra.mxu1 %v1069_v22 }
 0x281   :  { %v2949_v16 = vpop.permute.xlu1 %1011  ;;  %1173 = vmatprep.subr.bf16.mxu1 %v1066_v55  ;;  %v2951_v7 = vpop.permute.xlu0 %1021 }
 0x282   :  { %v1029_v47 = vsel %vm268_vm12, %v1010_v34, %v2949_v16 }
 0x284   :  { %1174 = vmatpush1.bf16.msra.mxu1 %v1065_v62 }
 0x285   :  { %v1020_v63 = vpop.permute.xlu1 %1019  ;;  %v1008_v60 = vpop.permute.xlu0 %1007 }
 0x286   :  { %v1032_v28 = vsel %vm268_vm12, %v1018_v49, %v1020_v63  ;;  %v1033_v37 = vsel %vm268_vm12, %v1020_v63, %v2951_v7  ;;  %v1028_v23 = vsel %vm268_vm12, %v1008_v60, %v1010_v34  ;;  %v3031_v60 = vld [vmem:[%s3157_s5 + $0x20] sm:$0xff] }
 0x287   :  { %1175 = vmatprep.subr.bf16.mxu1 %v1033_v37 }
 0x288   :  { %1176 = vmatpush1.bf16.msra.mxu1 %v1032_v28  ;;  %v3036_v28 = vld [vmem:[%s3157_s5] sm:$0xff] }
 0x289   :  { %v981_v46 = vpop.permute.xlu1 %980  ;;  %1177 = vmatprep.subr.bf16.mxu1 %v1029_v47  ;;  %v2959_v19 = vpop.permute.xlu0 %984 }
 0x28c   :  { %1178 = vmatpush1.bf16.msra.mxu1 %v1028_v23 }
 0x28d   :  { %v983_v40 = vpop.permute.xlu1 %982  ;;  %v973_v24 = vpop.permute.xlu0 %972 }
 0x28e   :  { %v995_v8 = vsel %vm148_vm3, %v981_v46, %v983_v40  ;;  %v996_v32 = vsel %vm148_vm3, %v983_v40, %v2959_v19 }
 0x28f   :  { %1179 = vmatprep.subr.bf16.mxu1 %v996_v32  ;;  %v3051_v32 = vld [vmem:[%s3157_s5 + $0x28] sm:$0xff] }
 0x290   :  { %1180 = vmatpush1.bf16.msra.mxu1 %v995_v8 }
 0x291   :  { %v2965_v53 = vpop.permute.xlu1 %974  ;;  %v971_v44 = vpop.permute.xlu0 %970 }
 0x292   :  { %v991_v58 = vsel %vm148_vm3, %v971_v44, %v973_v24  ;;  %v992_v41 = vsel %vm148_vm3, %v973_v24, %v2965_v53 }
 0x293   :  { %1181 = vmatprep.subr.bf16.mxu1 %v992_v41 }
 0x294   :  { %1182 = vmatpush1.bf16.msra.mxu1 %v991_v58 }
 0x295   :  { %v1092_v61 = vpop.permute.xlu1 %1091  ;;  %1183 = vmatprep.subr.bf16.mxu1 %v2846_v4  ;;  %v2971_v27 = vpop.permute.xlu0 %1095 }
 0x298   :  { %1184 = vmatpush1.bf16.msra.mxu1 %v2834_v50 }
 0x299   :  { %v1094_v57 = vpop.permute.xlu1 %1093  ;;  %1185 = vmatprep.subr.bf16.mxu1 %v2816_v52  ;;  %v1084_v48 = vpop.permute.xlu0 %1083 }
 0x29a   :  { %v1107_v9 = vsel %vm1101_vm4, %v1094_v57, %v2971_v27  ;;  %v1106_v4 = vsel %vm1101_vm4, %v1092_v61, %v1094_v57  ;;  %v3059_v61 = vld [vmem:[%s3157_s5 + $0x48] sm:$0xff] }
 0x29c   :  { %1186 = vmatpush1.bf16.msra.mxu1 %v2814_v26 }
 0x29d   :  { %v2978_v30 = vpop.permute.xlu1 %1085  ;;  %1199 = vmatprep.subr.bf16.mxu1 %v1107_v9  ;;  %v1082_v42 = vpop.permute.xlu0 %1081 }
 0x29e   :  { %v1103_v50 = vsel %vm1101_vm4, %v1084_v48, %v2978_v30  ;;  %v1102_v52 = vsel %vm1101_vm4, %v1082_v42, %v1084_v48  ;;  %v1278_v48 = vld [vmem:[%s3157_s5 + $0x8] sm:$0xff] }
 0x2a0   :  { %1200 = vmatpush2.bf16.msra.mxu1 %v1106_v4 }
 0x2a1   :  { %v1061_v10 = vpop.permute.xlu1 %1060  ;;  %1201 = vmatprep.subr.bf16.mxu1 %v1103_v50 }
 0x2a2   :  { %v1063_v20 = vpop.permute.xlu0 %1062  ;;  %v1071_v51 = vsel %vm388_vm10, %v2942_v31, %v1061_v10 }
 0x2a3   :  { %v1072_v26 = vsel %vm388_vm10, %v1061_v10, %v1063_v20 }
 0x2a4   :  { %1202 = vmatpush2.bf16.msra.mxu1 %v1102_v52 }
 0x2a5   :  { %v1051_v1 = vpop.permute.xlu1 %1050  ;;  %1220 = vmatprep.subr.bf16.mxu1 %v1072_v26 }
 0x2a6   :  { %v1053_v25 = vpop.permute.xlu0 %1052  ;;  %v1067_v56 = vsel %vm388_vm10, %v2940_v38, %v1051_v1 }
 0x2a7   :  { %1204 = vmatmul.mubr.bf16.vlgmr.msra.gmra.mxu1 %v1848_v21  ;;  %v1068_v54 = vsel %vm388_vm10, %v1051_v1, %v1053_v25  ;;  %v1279_v1 = vld [vmem:[%s3157_s5 + $0x10] sm:$0xff] }
 0x2a8   :  { %1221 = vmatpush1.bf16.msra.mxu1 %v1071_v51  ;;  %1478 = vmatprep.mubr.msk.bf16.mxu1 %vm1164_vm2, %v1851_v36 }
 0x2a9   :  { %v1024_v39 = vpop.permute.xlu1 %1023  ;;  %1222 = vmatprep.subr.bf16.mxu1 %v1068_v54 }
 0x2aa   :  { %v1026_v18 = vpop.permute.xlu0 %1025  ;;  %v1034_v59 = vsel %vm268_vm12, %v2951_v7, %v1024_v39 }
 0x2ab   :  { %v1035_v11 = vsel %vm268_vm12, %v1024_v39, %v1026_v18 }
 0x2ac   :  { %1223 = vmatpush1.bf16.msra.mxu1 %v1067_v56 }
 0x2ad   :  { %v1014_v33 = vpop.permute.xlu1 %1013  ;;  %1224 = vmatprep.subr.bf16.mxu1 %v1035_v11 }
 0x2ae   :  { %v1016_v17 = vpop.permute.xlu0 %1015  ;;  %v1030_v38 = vsel %vm268_vm12, %v2949_v16, %v1014_v33 }
 0x2af   :  { %1212 = vmatmul.mubr.bf16.gmra.mxu1 %v1853_v3  ;;  %v1031_v0 = vsel %vm268_vm12, %v1014_v33, %v1016_v17  ;;  %v3084_v33 = vld [vmem:[%s3157_s5 + $0x38] sm:$0xff] }
 0x2b0   :  { %1225 = vmatpush1.bf16.msra.mxu1 %v1034_v59  ;;  %1479 = vmatprep.mubr.msk.bf16.mxu1 %vm1164_vm2, %v2880_v12 }
 0x2b1   :  { %v987_v2 = vpop.permute.xlu1 %986  ;;  %1226 = vmatprep.subr.bf16.mxu1 %v1031_v0 }
 0x2b2   :  { %v989_v35 = vpop.permute.xlu0 %988  ;;  %v997_v31 = vsel %vm148_vm3, %v2959_v19, %v987_v2  ;;  %v3043_v19 = vld [vmem:[%s3157_s5 + $0x40] sm:$0xff] }
 0x2b3   :  { %v998_v43 = vsel %vm148_vm3, %v987_v2, %v989_v35  ;;  %v1280_v35 = vld [vmem:[%s3157_s5 + $0x18] sm:$0xff] }
 0x2b4   :  { %1227 = vmatpush1.bf16.msra.mxu1 %v1030_v38 }
 0x2b5   :  { %v977_v13 = vpop.permute.xlu1 %976  ;;  %1228 = vmatprep.subr.bf16.mxu1 %v998_v43 }
 0x2b6   :  { %v979_v49 = vpop.permute.xlu0 %978  ;;  %v993_v12 = vsel %vm148_vm3, %v2965_v53, %v977_v13 }
 0x2b7   :  { %v994_v5 = vsel %vm148_vm3, %v977_v13, %v979_v49  ;;  %vm1295_vm3 = vcmask 883712  }
 0x2b8   :  { %1229 = vmatpush1.bf16.msra.mxu1 %v997_v31 }
 0x2b9   :  { %1230 = vmatprep.subr.bf16.mxu1 %v994_v5  ;;  %v1098_v34 = vpop.permute.xlu1 %1097 }
 0x2ba   :  { %v1100_v22 = vpop.permute.xlu0 %1099  ;;  %v1108_v7 = vsel %vm1101_vm4, %v2971_v27, %v1098_v34 }
 0x2bb   :  { %v1109_v45 = vsel %vm1101_vm4, %v1098_v34, %v1100_v22 }
 0x2bc   :  { %1231 = vmatpush1.bf16.msra.mxu1 %v993_v12 }
 0x2bd   :  { %1232 = vmatprep.subr.bf16.mxu1 %v2900_v6  ;;  %v1088_v55 = vpop.permute.xlu1 %1087 }
 0x2be   :  { %v1090_v16 = vpop.permute.xlu0 %1089  ;;  %v1104_v6 = vsel %vm1101_vm4, %v2978_v30, %v1088_v55 }
 0x2bf   :  { %v1105_v62 = vsel %vm1101_vm4, %v1088_v55, %v1090_v16 }
 0x2c0   :  { %1233 = vmatpush1.bf16.msra.mxu1 %v2840_v14 }
 0x2c1   :  { %1234 = vmatprep.subr.bf16.mxu1 %v2905_v29 }
 0x2c4   :  { %1235 = vmatpush1.bf16.msra.mxu1 %v2828_v15 }
 0x2c5   :  { %1248 = vmatprep.subr.bf16.mxu1 %v1109_v45 }
 0x2c8   :  { %1249 = vmatpush2.bf16.msra.mxu1 %v1108_v7 }
 0x2c9   :  { %1250 = vmatprep.subr.bf16.mxu1 %v1105_v62 }
 0x2ca   :  { %v3025_v15 = vpop.permute.xlu1 %1128 }
 0x2cb   :  { %v3038_v47 = vpop.permute.xlu0 %1133 }
 0x2cc   :  { %1251 = vmatpush2.bf16.msra.mxu1 %v1104_v6 }
 0x2ce   :  { %v1139_v27 = vpop.permute.xlu1 %1138 }
 0x2cf   :  { %1253 = vmatmul.mubr.bf16.vlgmr.msra.gmra.mxu1 %v1848_v21  ;;  %v1144_v26 = vpop.permute.xlu0 %1143 }
 0x2d0   :  { %1480 = vmatprep.mubr.msk.bf16.mxu1 %vm1164_vm2, %v1851_v36  ;;  %v1483_v36 = vld [vmem:[%s3157_s5 + $0x30] sm:$0xff] }
 0x2d7   :  { %1261 = vmatmul.mubr.bf16.gmra.mxu1 %v1853_v3  ;;  %v1487_v3 = vld [vmem:[%s3157_s5 + $0x50] sm:$0xff] }
 0x367   :  { %v1205_v14 = vpop.f32.mrf.mxu1 }
 0x368   :  { %v1206_v29 = vadd.f32 %v1205_v14, %v3025_v15 }
 0x369   :  { %v1207_v63 = vpop.f32.mrf.mxu1 }
 0x36a   :  { %v1269_v37 = vmax.f32 %v1206_v29, 0.0 }
 0x36b   :  { %v1208_v46 = vpop.f32.mrf.mxu1 }
 0x36c   :  { %v1209_v23 = vadd.f32 %v1208_v46, %v3038_v47  ;;  %v1308_v40 = vmul.f32 %v3031_v60, %v1269_v37  ;;  %v1291_v24 = vmul.f32 %v3036_v28, %v1269_v37  ;;  %v1324_v41 = vmul.f32 %v3043_v19, %v1269_v37 }
 0x36d   :  { %v1210_v8 = vpop.f32.mrf.mxu1 }
 0x36e   :  { %v1271_v53 = vmax.f32 %v1209_v23, 0.0  ;;  %v1312_v44 = vsel %vm1295_vm3, %v1308_v40, 0.0  ;;  %v1296_v58 = vsel %vm1295_vm3, %v1291_v24, 0.0  ;;  %v1328_v10 = vsel %vm1295_vm3, %v1324_v41, 0.0 }
 0x36f   :  { %v1213_v57 = vpop.f32.mrf.mxu1  ;;  %1313 = vadd.xlane.f32.xlu0 %v1312_v44  ;;  %1297 = vadd.xlane.f32.xlu1 %v1296_v58 }
 0x370   :  { %v1214_v9 = vadd.f32 %v1213_v57, %v1139_v27  ;;  %v1309_v30 = vmul.f32 %v3051_v32, %v1271_v53  ;;  %v1325_v4 = vmul.f32 %v3059_v61, %v1271_v53  ;;  %v1292_v52 = vmul.f32 %v1278_v48, %v1271_v53 }
 0x371   :  { %v1215_v42 = vpop.f32.mrf.mxu1 }
 0x372   :  { %v1273_v50 = vmax.f32 %v1214_v9, 0.0  ;;  %v1315_v20 = vsel %vm1295_vm3, %v1309_v30, 0.0  ;;  %v1331_v51 = vsel %vm1295_vm3, %v1325_v4, 0.0  ;;  %v1299_v18 = vsel %vm1295_vm3, %v1292_v52, 0.0 }
 0x373   :  { %v1216_v21 = vpop.f32.mrf.mxu1  ;;  %1329 = vadd.xlane.f32.xlu0 %v1328_v10  ;;  %1316 = vadd.xlane.f32.xlu1 %v1315_v20 }
 0x374   :  { %v1217_v25 = vadd.f32 %v1216_v21, %v1144_v26  ;;  %v1310_v56 = vmul.f32 %v1483_v36, %v1273_v50  ;;  %v1293_v11 = vmul.f32 %v1279_v1, %v1273_v50  ;;  %v1326_v0 = vmul.f32 %v1487_v3, %v1273_v50 }
 0x375   :  { %v1218_v54 = vpop.f32.mrf.mxu1 }
 0x376   :  { %v3075_v39 = vmax.f32 %v1217_v25, 0.0  ;;  %v1318_v17 = vsel %vm1295_vm3, %v1310_v56, 0.0  ;;  %v1302_v59 = vsel %vm1295_vm3, %v1293_v11, 0.0  ;;  %v1334_v38 = vsel %vm1295_vm3, %v1326_v0, 0.0 }
 0x377   :  { %1332 = vadd.xlane.f32.xlu1 %v1331_v51  ;;  %1300 = vadd.xlane.f32.xlu0 %v1299_v18 }
 0x378   :  { %v1311_v2 = vmul.f32 %v3084_v33, %v3075_v39  ;;  %v1294_v13 = vmul.f32 %v1280_v35, %v3075_v39 }
 0x37a   :  { %v1321_v43 = vsel %vm1295_vm3, %v1311_v2, 0.0  ;;  %v1305_v49 = vsel %vm1295_vm3, %v1294_v13, 0.0 }
 0x37b   :  { %1319 = vadd.xlane.f32.xlu1 %v1318_v17  ;;  %1303 = vadd.xlane.f32.xlu0 %v1302_v59 }
 0x37f   :  { %1335 = vadd.xlane.f32.xlu0 %v1334_v38  ;;  %1322 = vadd.xlane.f32.xlu1 %v1321_v43 }
 0x383   :  { %1306 = vadd.xlane.f32.xlu0 %v1305_v49 }
 0x38f   :  { %v1254_v31 = vpop.f32.mrf.mxu1 }
 0x391   :  { %v1255_v5 = vpop.f32.mrf.mxu1 }
 0x392   :  { %v1256_v12 = vadd.f32 %v1255_v5, %v3025_v15 }
 0x393   :  { %v1257_v34 = vpop.f32.mrf.mxu1 }
 0x394   :  { %v1270_v22 = vmax.f32 %v1256_v12, 0.0 }
 0x395   :  { %v1258_v45 = vpop.f32.mrf.mxu1 }
 0x396   :  { %v1259_v55 = vadd.f32 %v1258_v45, %v3038_v47  ;;  %v1364_v16 = vmul.f32 %v3036_v28, %v1270_v22  ;;  %v1380_v14 = vmul.f32 %v3031_v60, %v1270_v22  ;;  %v1396_v15 = vmul.f32 %v3043_v19, %v1270_v22 }
 0x397   :  { %v1262_v7 = vpop.f32.mrf.mxu1 }
 0x398   :  { %v1272_v62 = vmax.f32 %v1259_v55, 0.0  ;;  %v1368_v6 = vsel %vm1295_vm3, %v1364_v16, 0.0  ;;  %v1384_v47 = vsel %vm1295_vm3, %v1380_v14, 0.0  ;;  %v1400_v60 = vsel %vm1295_vm3, %v1396_v15, 0.0 }
 0x399   :  { %v1263_v29 = vpop.f32.mrf.mxu1  ;;  %1369 = vadd.xlane.f32.xlu0 %v1368_v6 }
 0x39a   :  { %v1264_v63 = vadd.f32 %v1263_v29, %v1139_v27  ;;  %v1365_v37 = vmul.f32 %v1278_v48, %v1272_v62  ;;  %v1381_v28 = vmul.f32 %v3051_v32, %v1272_v62  ;;  %v1397_v58 = vmul.f32 %v3059_v61, %v1272_v62  ;;  %v1488_v48 = vld [vmem:[%s3157_s5 + $0x58] sm:$0xff] }
 0x39b   :  { %v1265_v46 = vpop.f32.mrf.mxu1  ;;  %v1327_v42 = vmul.f32 %v1488_v48, %v3075_v39 }
 0x39c   :  { %v1274_v23 = vmax.f32 %v1264_v63, 0.0  ;;  %v1371_v40 = vsel %vm1295_vm3, %v1365_v37, 0.0  ;;  %v1387_v44 = vsel %vm1295_vm3, %v1381_v28, 0.0  ;;  %v1403_v19 = vsel %vm1295_vm3, %v1397_v58, 0.0 }
 0x39d   :  { %v1266_v24 = vpop.f32.mrf.mxu1  ;;  %1372 = vadd.xlane.f32.xlu1 %v1371_v40  ;;  %1385 = vadd.xlane.f32.xlu0 %v1384_v47  ;;  %v1337_v50 = vsel %vm1295_vm3, %v1327_v42, 0.0 }
 0x39e   :  { %v1267_v8 = vadd.f32 %v1266_v24, %v1144_v26  ;;  %v1366_v41 = vmul.f32 %v1279_v1, %v1274_v23  ;;  %v1382_v57 = vmul.f32 %v1483_v36, %v1274_v23  ;;  %v1398_v61 = vmul.f32 %v1487_v3, %v1274_v23 }
 0x3a0   :  { %v1276_v53 = vmax.f32 %v1267_v8, 0.0  ;;  %v1374_v27 = vsel %vm1295_vm3, %v1366_v41, 0.0  ;;  %v1390_v9 = vsel %vm1295_vm3, %v1382_v57, 0.0  ;;  %v1406_v4 = vsel %vm1295_vm3, %v1398_v61, 0.0 }
 0x3a1   :  { %1388 = vadd.xlane.f32.xlu1 %v1387_v44  ;;  %1401 = vadd.xlane.f32.xlu0 %v1400_v60 }
 0x3a2   :  { %v1367_v32 = vmul.f32 %v1280_v35, %v1276_v53  ;;  %v1383_v10 = vmul.f32 %v3084_v33, %v1276_v53  ;;  %v1399_v52 = vmul.f32 %v1488_v48, %v1276_v53 }
 0x3a4   :  { %v1377_v30 = vsel %vm1295_vm3, %v1367_v32, 0.0  ;;  %v1393_v20 = vsel %vm1295_vm3, %v1383_v10, 0.0  ;;  %v1409_v26 = vsel %vm1295_vm3, %v1399_v52, 0.0 }
 0x3a5   :  { %1404 = vadd.xlane.f32.xlu1 %v1403_v19  ;;  %1375 = vadd.xlane.f32.xlu0 %v1374_v27 }
 0x3a9   :  { %1391 = vadd.xlane.f32.xlu1 %v1390_v9  ;;  %1378 = vadd.xlane.f32.xlu0 %v1377_v30 }
 0x3ad   :  { %1407 = vadd.xlane.f32.xlu1 %v1406_v4  ;;  %1338 = vadd.xlane.f32.xlu0 %v1337_v50 }
 0x3b1   :  { %1394 = vadd.xlane.f32.xlu1 %v1393_v20 }
 0x3b5   :  { %1410 = vadd.xlane.f32.xlu1 %v1409_v26 }
 0x3f8   :  { %v1314_v21 = vpop.xlane.xlu0 %1313  ;;  %v1298_v1 = vpop.xlane.xlu1 %1297 }
 0x3f9   :  { %v1341_v49 = vsel %vm1340_vm5, %v1298_v1, %v1314_v21  ;;  %v1489_v1 = vld [vmem:[%s3158_s6] ss:$0 sm:$0xff] }
 0x3fc   :  { %v1330_v36 = vpop.xlane.xlu0 %1329  ;;  %v1317_v51 = vpop.xlane.xlu1 %1316 }
 0x3fd   :  { %v1346_v5 = vsel %vm1345_vm6, %v1341_v49, %v1330_v36 }
 0x3fe   :  { %v1351_v55 = vsel %vm1350_vm7, %v1346_v5, 0.0 }
 0x400   :  { %v1301_v25 = vpop.xlane.xlu0 %1300  ;;  %v1333_v39 = vpop.xlane.xlu1 %1332 }
 0x401   :  { %v1342_v35 = vsel %vm1340_vm5, %v1301_v25, %v1317_v51 }
 0x402   :  { %v1347_v13 = vsel %vm1345_vm6, %v1342_v35, %v1333_v39 }
 0x403   :  { %v1352_v34 = vsel %vm1350_vm7, %v1347_v13, 0.0 }
 0x404   :  { %v1304_v54 = vpop.xlane.xlu0 %1303  ;;  %v1320_v56 = vpop.xlane.xlu1 %1319  ;;  %v1353_v7 = vadd.f32 %v1352_v34, %v1351_v55 }
 0x405   :  { %v1343_v31 = vsel %vm1340_vm5, %v1304_v54, %v1320_v56 }
 0x408   :  { %v1336_v18 = vpop.xlane.xlu0 %1335  ;;  %v1323_v3 = vpop.xlane.xlu1 %1322 }
 0x409   :  { %v1348_v12 = vsel %vm1345_vm6, %v1343_v31, %v1336_v18 }
 0x40a   :  { %v1354_v16 = vsel %vm1350_vm7, %v1348_v12, 0.0 }
 0x40b   :  { %v1355_v63 = vadd.f32 %v1354_v16, %v1353_v7 }
 0x40c   :  { %v1307_v11 = vpop.xlane.xlu0 %1306 }
 0x40d   :  { %v1344_v62 = vsel %vm1340_vm5, %v1307_v11, %v1323_v3 }
 0x422   :  { %v1370_v33 = vpop.xlane.xlu0 %1369 }
 0x426   :  { %v1373_v17 = vpop.xlane.xlu1 %1372  ;;  %v1386_v59 = vpop.xlane.xlu0 %1385 }
 0x427   :  { %v1412_v15 = vsel %vm1340_vm5, %v1370_v33, %v1386_v59 }
 0x42a   :  { %v1389_v0 = vpop.xlane.xlu1 %1388  ;;  %v1402_v2 = vpop.xlane.xlu0 %1401 }
 0x42b   :  { %v1413_v6 = vsel %vm1340_vm5, %v1373_v17, %v1389_v0  ;;  %v1416_v47 = vsel %vm1345_vm6, %v1412_v15, %v1402_v2 }
 0x42c   :  { %v1420_v44 = vsel %vm1350_vm7, %v1416_v47, 0.0 }
 0x42e   :  { %v1405_v38 = vpop.xlane.xlu1 %1404  ;;  %v1376_v43 = vpop.xlane.xlu0 %1375 }
 0x42f   :  { %v1417_v37 = vsel %vm1345_vm6, %v1413_v6, %v1405_v38 }
 0x430   :  { %v1421_v8 = vsel %vm1350_vm7, %v1417_v37, 0.0 }
 0x431   :  { %v1422_v41 = vadd.f32 %v1421_v8, %v1420_v44 }
 0x432   :  { %v1392_v22 = vpop.xlane.xlu1 %1391  ;;  %v1379_v45 = vpop.xlane.xlu0 %1378 }
 0x433   :  { %v1414_v23 = vsel %vm1340_vm5, %v1376_v43, %v1392_v22 }
 0x436   :  { %v1408_v14 = vpop.xlane.xlu1 %1407  ;;  %v1339_v29 = vpop.xlane.xlu0 %1338 }
 0x437   :  { %v1349_v46 = vsel %vm1345_vm6, %v1344_v62, %v1339_v29  ;;  %v1418_v28 = vsel %vm1345_vm6, %v1414_v23, %v1408_v14 }
 0x438   :  { %v1356_v40 = vsel %vm1350_vm7, %v1349_v46, 0.0  ;;  %v1423_v58 = vsel %vm1350_vm7, %v1418_v28, 0.0 }
 0x439   :  { %v1357_v24 = vadd.f32 %v1356_v40, %v1355_v63  ;;  %v1424_v32 = vadd.f32 %v1423_v58, %v1422_v41 }
 0x43a   :  { %v1395_v60 = vpop.xlane.xlu1 %1394 }
 0x43b   :  { %v1358_v53 = vrot.slane %v1357_v24, 4  ;;  %v1415_v27 = vsel %vm1340_vm5, %v1379_v45, %v1395_v60 }
 0x43d   :  { %v1359_v19 = vadd.f32 %v1358_v53, %v1357_v24 }
 0x43e   :  { %v1411_v57 = vpop.xlane.xlu1 %1410 }
 0x43f   :  { %v1419_v48 = vsel %vm1345_vm6, %v1415_v27, %v1411_v57  ;;  %v1360_v30 = vrot.slane %v1359_v19, 2 }
 0x440   :  { %v1425_v9 = vsel %vm1350_vm7, %v1419_v48, 0.0 }
 0x441   :  { %v1426_v61 = vadd.f32 %v1425_v9, %v1424_v32  ;;  %v1361_v4 = vadd.f32 %v1360_v30, %v1359_v19 }
 0x443   :  { %v1427_v42 = vrot.slane %v1426_v61, 4  ;;  %v1362_v20 = vrot.slane %v1361_v4, 1 }
 0x445   :  { %v1428_v50 = vadd.f32 %v1427_v42, %v1426_v61  ;;  %v1363_v21 = vadd.f32 %v1362_v20, %v1361_v4 }
 0x447   :  { %v1429_v10 = vrot.slane %v1428_v50, 2 }
 0x449   :  { %v1430_v52 = vadd.f32 %v1429_v10, %v1428_v50 }
 0x44b   :  { %v1431_v26 = vrot.slane %v1430_v52, 1 }
 0x44d   :  { %v1432_v36 = vadd.f32 %v1431_v26, %v1430_v52 }
 0x44f   :  { %v1434_v25 = vsel %vm1433_vm8, %v1363_v21, %v1432_v36 }
 0x450   :  { %v1442_v51 = vadd.f32 %v1489_v1, %v1434_v25 }
 0x452   :  { %v1443_v54 = vmax.f32 %v1442_v51, 0.0 }
 0x454   :  { %1445 = vst.msk [vmem:[#allocation2] sm:$0x3] %vm1444_vm9, %v1443_v54 }
 0x455   :  { %1867 = shalt.err (!%p1864_p4)
}
 0x456   :  { %1455 = dma.vmem_to_hbm [thread:$0]  %s1453_s16, 32, %s3159_s7, [#allocation3]  }
 0x457   :  { %1876 = dma.done.wait [#allocation3], 32  }
 0x458   :  { %1877 = vsyncadd [#allocation3], 4294967264 }
 0x459   :  { %1459 = vsyncpa [#allocation3], 1 }

</bundles_post_ra>
